<compile_context>
chip_gen: v5e
topology: v5e:2x2
jax: 0.10.0
libtpu: 0.0.40
codegen_flags: <defaults>
</compile_context>

<pallas_src>
import functools

import numpy as np
import jax
import jax.numpy as jnp
from jax.experimental import pallas as pl
from jax.experimental.pallas import tpu as pltpu

BIN_SIZES = (1, 2, 4, 6)


# ----------------------------------------------------------------------------- helpers
def adaptive_pool_matrix(in_size: int, out_size: int) -> np.ndarray:
    """Row-stochastic matrix M[out, in] implementing AdaptiveAvgPool1d semantics."""
    m = np.zeros((out_size, in_size), np.float32)
    for i in range(out_size):
        s = (i * in_size) // out_size
        e = -(-((i + 1) * in_size) // out_size)  # ceil
        m[i, s:e] = 1.0 / (e - s)
    return m


def bilinear_matrix(out_size: int, in_size: int) -> np.ndarray:
    """Matrix M[out, in] implementing 1-D bilinear resize with align_corners=True."""
    m = np.zeros((out_size, in_size), np.float32)
    if in_size == 1:
        m[:, 0] = 1.0
        return m
    for o in range(out_size):
        src = o * (in_size - 1) / (out_size - 1)
        i0 = min(int(np.floor(src)), in_size - 1)
        frac = src - i0
        m[o, i0] += 1.0 - frac
        if i0 + 1 < in_size:
            m[o, i0 + 1] += frac
    return m


# ----------------------------------------------------------------------------- kernel
def _psp_kernel(x_ref,     # [1, C, HW]    f32   input features (one batch elem), channels-first
                pT_ref,    # [HW, BBp]     f32   stacked adaptive-pool operator (transposed)
                uT_ref,    # [BBp, HW]     f32   stacked bilinear-upsample operator (transposed)
                wsT_ref,   # [ns*oc, C]    f32   stacked folded 1x1 conv (+BN scale), transposed
                ssT_ref,   # [ns*oc, 1]    f32   stacked BN shifts
                smT_ref,   # [ns*oc, BBp]  f32   per-stage block-diagonal mask
                wcT_ref,   # [3, C, 3*Ct]  bf16  folded 3x3 conv+BN: [kx, c_out, ky*Ct + c_in]
                bshT_ref,  # [C, 1]        f32   bottleneck BN shift
                o_ref,     # [1, C, HW]    f32   output
                *, H, W):
    HW = H * W
    f32 = jnp.float32
    bf16 = jnp.bfloat16

    xT = x_ref[0]                                                          # [C, HW]

    # ---- pyramid stages, fused over the 4 bins (all f32 — negligible FLOPs, better accuracy):
    #      pool -> 1x1 conv + BN shift -> ReLU -> bilinear upsample
    pooledT = jnp.dot(xT, pT_ref[...], preferred_element_type=f32)         # [C, BBp]
    zT = jnp.dot(wsT_ref[...], pooledT,
                 preferred_element_type=f32) + ssT_ref[...]                # [ns*oc, BBp]
    yT = jnp.maximum(zT, 0.0) * smT_ref[...]                               # kill cross-stage blocks
    upT = jnp.dot(yT, uT_ref[...], preferred_element_type=f32)             # [ns*oc, HW]

    catT = jnp.concatenate([xT, upT], axis=0)                              # [Ct, HW] f32

    # ---- 3x3 conv (padding=1): im2col over dy via lane rolls + row masks (no scratch).
    idx = jax.lax.broadcasted_iota(jnp.int32, (1, HW), 1)                  # flattened spatial index
    col = idx % W
    zc = jnp.zeros_like(catT)
    cat_up = jnp.where(idx >= W, pltpu.roll(catT, W, axis=1), zc)          # cat[i - W] (dy = -1)
    cat_dn = jnp.where(idx < HW - W, pltpu.roll(catT, HW - W, axis=1), zc)  # cat[i + W] (dy = +1)
    bbT = jnp.concatenate([cat_up.astype(bf16), catT.astype(bf16),
                           cat_dn.astype(bf16)], axis=0)                   # [3*Ct, HW] bf16

    # One matmul per dx tap, K = 3*Ct (weights stacked over ky to match bbT's block order).
    p_m1 = jnp.dot(wcT_ref[0], bbT, preferred_element_type=f32)            # dx = -1, [C, HW]
    p_0 = jnp.dot(wcT_ref[1], bbT, preferred_element_type=f32)             # dx =  0
    p_p1 = jnp.dot(wcT_ref[2], bbT, preferred_element_type=f32)            # dx = +1

    # dx = +-1: shift by one spatial column along lanes; col masks kill the row-wrap columns.
    acc = p_0
    acc = acc + jnp.where(col > 0, pltpu.roll(p_m1, 1, axis=1), 0.0)       # uses cat[.., x-1]
    acc = acc + jnp.where(col < W - 1, pltpu.roll(p_p1, HW - 1, axis=1), 0.0)  # uses cat[.., x+1]

    out = jnp.maximum(acc + bshT_ref[...], 0.0)                            # bottleneck BN + ReLU
    o_ref[0] = out.astype(o_ref.dtype)                                     # lane-dense [C, HW] store


# ----------------------------------------------------------------------------- params
def init_params(key, C):
    ns = len(BIN_SIZES)
    oc = C // ns
    Ct = C + oc * ns
    eps = 1e-5
    keys = iter(jax.random.split(key, 32))
    params = {"C": C, "oc": oc, "Ct": Ct, "stages": []}

    for _b in BIN_SIZES:
        # corresponds to torch Conv2d(C, oc, 1, bias=False).weight[:, :, 0, 0].T
        w = jax.random.normal(next(keys), (C, oc), jnp.float32) * 0.1
        gamma = 1.0 + 0.1 * jax.random.normal(next(keys), (oc,), jnp.float32)
        beta = 0.1 * jax.random.normal(next(keys), (oc,), jnp.float32)
        rmean = 0.1 * jax.random.normal(next(keys), (oc,), jnp.float32)
        rvar = 0.5 + jax.random.uniform(next(keys), (oc,), jnp.float32)
        scale = gamma / jnp.sqrt(rvar + eps)
        shift = beta - rmean * scale
        params["stages"].append({"w_folded": w * scale[None, :],
                                 "shift": shift[None, :]})

    # corresponds to torch Conv2d(Ct, C, 3, padding=1, bias=False).weight.permute(2,3,1,0)
    wb = jax.random.normal(next(keys), (3, 3, Ct, C), jnp.float32) * 0.05
    gamma = 1.0 + 0.1 * jax.random.normal(next(keys), (C,), jnp.float32)
    beta = 0.1 * jax.random.normal(next(keys), (C,), jnp.float32)
    rmean = 0.1 * jax.random.normal(next(keys), (C,), jnp.float32)
    rvar = 0.5 + jax.random.uniform(next(keys), (C,), jnp.float32)
    scale = gamma / jnp.sqrt(rvar + eps)
    shift = beta - rmean * scale
    params["wb_full"] = wb * scale[None, None, None, :]    # [3, 3, Ct, C], HWIO, BN folded
    params["b_shift"] = shift[None, :]                     # [1, C]
    return params


# ----------------------------------------------------------------------------- wrapper
def psp_module_forward(x_nchw, params):
    N, C, H, W = x_nchw.shape
    oc, Ct = params["oc"], params["Ct"]
    ns = len(BIN_SIZES)
    HW = H * W

    # Channels-first layout needs no transpose: NCHW -> [N, C, H*W].
    x = x_nchw.reshape(N, C, HW)

    # Stacked pool / upsample operators + per-stage block mask (host-built, then transposed).
    tot = sum(b * b for b in BIN_SIZES)
    BBp = max(8, ((tot + 7) // 8) * 8)
    P_all = np.zeros((BBp, HW), np.float32)
    U_all = np.zeros((HW, BBp), np.float32)
    smask = np.zeros((BBp, ns * oc), np.float32)
    off = 0
    for si, b in enumerate(BIN_SIZES):
        bb = b * b
        P_all[off:off + bb, :] = np.kron(adaptive_pool_matrix(H, b), adaptive_pool_matrix(W, b))
        U_all[:, off:off + bb] = np.kron(bilinear_matrix(H, b), bilinear_matrix(W, b))
        smask[off:off + bb, si * oc:(si + 1) * oc] = 1.0
        off += bb

    pT = jnp.asarray(P_all.T)                     # [HW, BBp]   f32 (kept f32 for accuracy)
    uT = jnp.asarray(U_all.T)                     # [BBp, HW]   f32
    smT = jnp.asarray(smask.T)                    # [ns*oc, BBp]
    wsT = jnp.concatenate([s["w_folded"] for s in params["stages"]], axis=1).T   # [ns*oc, C]
    ssT = jnp.concatenate([s["shift"] for s in params["stages"]], axis=1).T      # [ns*oc, 1]
    # 3x3 weights regrouped by kx (dx):  wcT[kx, c_out, ky*Ct + c_in] = wb_full[ky, kx, c_in, c_out]
    wcT = jnp.transpose(params["wb_full"], (1, 3, 0, 2)).reshape(3, C, 3 * Ct).astype(jnp.bfloat16)
    bshT = params["b_shift"].T                    # [C, 1]

    kernel = functools.partial(_psp_kernel, H=H, W=W)

    cm2 = lambda n: (0, 0)
    cm3 = lambda n: (0, 0, 0)
    in_specs = [
        pl.BlockSpec((1, C, HW), lambda n: (n, 0, 0)),
        pl.BlockSpec((HW, BBp), cm2),
        pl.BlockSpec((BBp, HW), cm2),
        pl.BlockSpec((ns * oc, C), cm2),
        pl.BlockSpec((ns * oc, 1), cm2),
        pl.BlockSpec((ns * oc, BBp), cm2),
        pl.BlockSpec((3, C, 3 * Ct), cm3),
        pl.BlockSpec((C, 1), cm2),
    ]

    # Advisory cost estimate so XLA schedules surrounding HLOs around the custom call.
    flops = 2 * N * (C * HW * BBp + ns * oc * C * BBp + ns * oc * BBp * HW
                     + 3 * C * (3 * Ct) * HW)
    bytes_accessed = (4 * N * C * HW * 2                              # x in + out
                      + 4 * (HW * BBp * 2 + ns * oc * (C + 1 + BBp) + C)
                      + 2 * 3 * C * 3 * Ct)                           # bf16 conv weights
    cost = pl.CostEstimate(flops=flops, transcendentals=0, bytes_accessed=bytes_accessed)

    out = pl.pallas_call(
        kernel,
        out_shape=jax.ShapeDtypeStruct((N, C, HW), jnp.float32),
        grid_spec=pltpu.PrefetchScalarGridSpec(
            num_scalar_prefetch=0,
            grid=(N,),
            in_specs=in_specs,
            out_specs=pl.BlockSpec((1, C, HW), lambda n: (n, 0, 0)),
        ),
        compiler_params=pltpu.CompilerParams(dimension_semantics=("parallel",)),
        cost_estimate=cost,
    )(x, pT, uT, wsT, ssT, smT, wcT, bshT)

    return out.reshape(N, C, H, W)


# ----------------------------------------------------------------------------- reference
def psp_reference(x_nchw, params, H, W):
    """Pure-JAX (non-Pallas) f32 reference of the eval-mode PSP forward."""
    N, C = x_nchw.shape[0], x_nchw.shape[1]
    HW = H * W
    hp = jax.lax.Precision.HIGHEST
    xf = jnp.transpose(x_nchw, (0, 2, 3, 1)).reshape(N, HW, C)
    feats = [xf]
    for b, st in zip(BIN_SIZES, params["stages"]):
        P = jnp.asarray(np.kron(adaptive_pool_matrix(H, b), adaptive_pool_matrix(W, b)))
        U = jnp.asarray(np.kron(bilinear_matrix(H, b), bilinear_matrix(W, b)))
        pooled = jnp.einsum("ph,nhc->npc", P, xf, precision=hp)
        y = jnp.maximum(jnp.einsum("npc,co->npo", pooled, st["w_folded"], precision=hp)
                        + st["shift"], 0.0)
        feats.append(jnp.einsum("hp,npo->nho", U, y, precision=hp))
    cat = jnp.concatenate(feats, axis=-1).reshape(N, H, W, -1)
    out = jax.lax.conv_general_dilated(
        cat, params["wb_full"], window_strides=(1, 1), padding="SAME",
        dimension_numbers=("NHWC", "HWIO", "NHWC"), precision=hp)
    out = jnp.maximum(out + params["b_shift"], 0.0)
    return jnp.transpose(out, (0, 3, 1, 2))


# ----------------------------------------------------------------------------- main
if __name__ == "__main__":
    key = jax.random.PRNGKey(0)
    k_x, k_p = jax.random.split(key)

    N, C, H, W = 2, 32, 16, 16          # in_channels must be divisible by 4
    x = jax.random.normal(k_x, (N, C, H, W), jnp.float32)
    params = init_params(k_p, C)

    out = psp_module_forward(x, params)
    jax.block_until_ready(out)

    assert out.shape == (N, C, H, W)
    assert bool(jnp.all(jnp.isfinite(out)))

    ref = psp_reference(x, params, H, W)
    max_err = float(jnp.max(jnp.abs(out - ref)))
    assert bool(jnp.allclose(out, ref, atol=5e-2, rtol=5e-2)), f"max abs err {max_err}"
    print("KERNEL_OK")
</pallas_src>

<mosaic_0001>
module attributes {stable_mosaic.version = 11 : i64} {
  func.func @_psp_kernel(%arg0: i32, %arg1: memref<1x32x256xf32, #tpu.memory_space<vmem>>, %arg2: memref<256x64xf32, #tpu.memory_space<vmem>>, %arg3: memref<64x256xf32, #tpu.memory_space<vmem>>, %arg4: memref<32x32xf32, #tpu.memory_space<vmem>>, %arg5: memref<32x1xf32, #tpu.memory_space<vmem>>, %arg6: memref<32x64xf32, #tpu.memory_space<vmem>>, %arg7: memref<3x32x192xbf16, #tpu.memory_space<vmem>>, %arg8: memref<32x1xf32, #tpu.memory_space<vmem>>, %arg9: memref<1x32x256xf32, #tpu.memory_space<vmem>>) attributes {dimension_semantics = [#tpu.dimension_semantics<parallel>], iteration_bounds = array<i64: 2>, scalar_prefetch = 0 : i64, scratch_operands = 0 : i64, tpu.core_type = #tpu.core_type<tc>, window_params = [{transform_indices = @transform_0, window_bounds = array<i64: 1, 32, 256>}, {pipeline_mode = #tpu.pipeline_mode<synchronous>, transform_indices = @transform_1, window_bounds = array<i64: 256, 64>}, {pipeline_mode = #tpu.pipeline_mode<synchronous>, transform_indices = @transform_2, window_bounds = array<i64: 64, 256>}, {pipeline_mode = #tpu.pipeline_mode<synchronous>, transform_indices = @transform_3, window_bounds = array<i64: 32, 32>}, {pipeline_mode = #tpu.pipeline_mode<synchronous>, transform_indices = @transform_4, window_bounds = array<i64: 32, 1>}, {pipeline_mode = #tpu.pipeline_mode<synchronous>, transform_indices = @transform_5, window_bounds = array<i64: 32, 64>}, {pipeline_mode = #tpu.pipeline_mode<synchronous>, transform_indices = @transform_6, window_bounds = array<i64: 3, 32, 192>}, {pipeline_mode = #tpu.pipeline_mode<synchronous>, transform_indices = @transform_7, window_bounds = array<i64: 32, 1>}, {transform_indices = @transform_8, window_bounds = array<i64: 1, 32, 256>}]} {
    %c0 = arith.constant 0 : index
    %c0_0 = arith.constant 0 : index
    %c0_1 = arith.constant 0 : index
    %0 = vector.load %arg1[%c0, %c0_0, %c0_1] : memref<1x32x256xf32, #tpu.memory_space<vmem>>, vector<1x32x256xf32>
    %1 = vector.shape_cast %0 : vector<1x32x256xf32> to vector<32x256xf32>
    %c0_2 = arith.constant 0 : index
    %c0_3 = arith.constant 0 : index
    %2 = vector.load %arg2[%c0_2, %c0_3] : memref<256x64xf32, #tpu.memory_space<vmem>>, vector<256x64xf32>
    %cst = arith.constant dense<0.000000e+00> : vector<32x64xf32>
    %3 = tpu.matmul %1, %2, %cst {dimension_numbers = #tpu.dot_dimension_numbers<[1], [0], [0], [1], [0, 0, 1, 1], [], []>} : vector<32x256xf32>, vector<256x64xf32>, vector<32x64xf32> -> vector<32x64xf32>
    %c0_4 = arith.constant 0 : index
    %c0_5 = arith.constant 0 : index
    %4 = vector.load %arg4[%c0_4, %c0_5] : memref<32x32xf32, #tpu.memory_space<vmem>>, vector<32x32xf32>
    %cst_6 = arith.constant dense<0.000000e+00> : vector<32x64xf32>
    %5 = tpu.matmul %4, %3, %cst_6 {dimension_numbers = #tpu.dot_dimension_numbers<[1], [0], [0], [1], [0, 0, 1, 1], [], []>} : vector<32x32xf32>, vector<32x64xf32>, vector<32x64xf32> -> vector<32x64xf32>
    %c0_7 = arith.constant 0 : index
    %c0_8 = arith.constant 0 : index
    %6 = vector.load %arg5[%c0_7, %c0_8] : memref<32x1xf32, #tpu.memory_space<vmem>>, vector<32x1xf32>
    %7 = vector.broadcast %6 : vector<32x1xf32> to vector<32x64xf32>
    %8 = arith.addf %5, %7 : vector<32x64xf32>
    %cst_9 = arith.constant 0.000000e+00 : f32
    %9 = vector.broadcast %cst_9 : f32 to vector<32x64xf32>
    %10 = arith.maximumf %8, %9 : vector<32x64xf32>
    %c0_10 = arith.constant 0 : index
    %c0_11 = arith.constant 0 : index
    %11 = vector.load %arg6[%c0_10, %c0_11] : memref<32x64xf32, #tpu.memory_space<vmem>>, vector<32x64xf32>
    %12 = arith.mulf %10, %11 : vector<32x64xf32>
    %c0_12 = arith.constant 0 : index
    %c0_13 = arith.constant 0 : index
    %13 = vector.load %arg3[%c0_12, %c0_13] : memref<64x256xf32, #tpu.memory_space<vmem>>, vector<64x256xf32>
    %cst_14 = arith.constant dense<0.000000e+00> : vector<32x256xf32>
    %14 = tpu.matmul %12, %13, %cst_14 {dimension_numbers = #tpu.dot_dimension_numbers<[1], [0], [0], [1], [0, 0, 1, 1], [], []>} : vector<32x64xf32>, vector<64x256xf32>, vector<32x256xf32> -> vector<32x256xf32>
    %15 = tpu.concatenate %1, %14 in 0 : vector<32x256xf32>, vector<32x256xf32> -> vector<64x256xf32>
    %16 = tpu.iota {dimensions = array<i32: 1>} : vector<1x256xi32>
    %c16_i32 = arith.constant 16 : i32
    %c0_i32 = arith.constant 0 : i32
    %17 = arith.cmpi eq, %c16_i32, %c0_i32 : i32
    %c1_i32 = arith.constant 1 : i32
    %18 = arith.select %17, %c1_i32, %c16_i32 : i32
    %19 = vector.broadcast %18 : i32 to vector<1x256xi32>
    %20 = arith.remsi %16, %19 : vector<1x256xi32>
    %c0_i32_15 = arith.constant 0 : i32
    %21 = vector.broadcast %c0_i32_15 : i32 to vector<1x256xi32>
    %22 = arith.cmpi ne, %20, %21 : vector<1x256xi32>
    %c0_i32_16 = arith.constant 0 : i32
    %23 = vector.broadcast %c0_i32_16 : i32 to vector<1x256xi32>
    %24 = arith.cmpi slt, %20, %23 : vector<1x256xi32>
    %c0_i32_17 = arith.constant 0 : i32
    %25 = arith.cmpi slt, %18, %c0_i32_17 : i32
    %26 = vector.broadcast %25 : i1 to vector<1x256xi1>
    %27 = vector.broadcast %26 : vector<1x256xi1> to vector<1x256xi1>
    %28 = arith.xori %24, %27 : vector<1x256xi1>
    %29 = arith.andi %28, %22 : vector<1x256xi1>
    %30 = vector.broadcast %18 : i32 to vector<1x256xi32>
    %31 = arith.addi %20, %30 : vector<1x256xi32>
    %32 = arith.select %29, %31, %20 : vector<1x256xi1>, vector<1x256xi32>
    %cst_18 = arith.constant 0.000000e+00 : f32
    %33 = vector.broadcast %cst_18 : f32 to vector<64x256xf32>
    %c16_i32_19 = arith.constant 16 : i32
    %34 = vector.broadcast %c16_i32_19 : i32 to vector<1x256xi32>
    %35 = arith.cmpi sge, %16, %34 : vector<1x256xi32>
    %c16_i32_20 = arith.constant 16 : i32
    %36 = tpu.dynamic_rotate %15 by %c16_i32_20 dim 1 : vector<64x256xf32>, i32 -> vector<64x256xf32>
    %37 = vector.shape_cast %35 : vector<1x256xi1> to vector<1x256xi1>
    %38 = vector.broadcast %37 : vector<1x256xi1> to vector<64x256xi1>
    %39 = arith.select %38, %36, %33 : vector<64x256xi1>, vector<64x256xf32>
    %c240_i32 = arith.constant 240 : i32
    %40 = vector.broadcast %c240_i32 : i32 to vector<1x256xi32>
    %41 = arith.cmpi slt, %16, %40 : vector<1x256xi32>
    %c240_i32_21 = arith.constant 240 : i32
    %42 = tpu.dynamic_rotate %15 by %c240_i32_21 dim 1 : vector<64x256xf32>, i32 -> vector<64x256xf32>
    %43 = vector.shape_cast %41 : vector<1x256xi1> to vector<1x256xi1>
    %44 = vector.broadcast %43 : vector<1x256xi1> to vector<64x256xi1>
    %45 = arith.select %44, %42, %33 : vector<64x256xi1>, vector<64x256xf32>
    %46 = arith.truncf %39 : vector<64x256xf32> to vector<64x256xbf16>
    %47 = arith.truncf %15 : vector<64x256xf32> to vector<64x256xbf16>
    %48 = arith.truncf %45 : vector<64x256xf32> to vector<64x256xbf16>
    %49 = tpu.concatenate %46, %47, %48 in 0 : vector<64x256xbf16>, vector<64x256xbf16>, vector<64x256xbf16> -> vector<192x256xbf16>
    %c0_22 = arith.constant 0 : index
    %c0_23 = arith.constant 0 : index
    %c0_24 = arith.constant 0 : index
    %50 = vector.load %arg7[%c0_22, %c0_23, %c0_24] : memref<3x32x192xbf16, #tpu.memory_space<vmem>>, vector<1x32x192xbf16>
    %51 = vector.shape_cast %50 : vector<1x32x192xbf16> to vector<32x192xbf16>
    %cst_25 = arith.constant dense<0.000000e+00> : vector<32x256xf32>
    %52 = tpu.matmul %51, %49, %cst_25 {dimension_numbers = #tpu.dot_dimension_numbers<[1], [0], [0], [1], [0, 0, 1, 1], [], []>} : vector<32x192xbf16>, vector<192x256xbf16>, vector<32x256xf32> -> vector<32x256xf32>
    %c1 = arith.constant 1 : index
    %c0_26 = arith.constant 0 : index
    %c0_27 = arith.constant 0 : index
    %53 = vector.load %arg7[%c1, %c0_26, %c0_27] : memref<3x32x192xbf16, #tpu.memory_space<vmem>>, vector<1x32x192xbf16>
    %54 = vector.shape_cast %53 : vector<1x32x192xbf16> to vector<32x192xbf16>
    %cst_28 = arith.constant dense<0.000000e+00> : vector<32x256xf32>
    %55 = tpu.matmul %54, %49, %cst_28 {dimension_numbers = #tpu.dot_dimension_numbers<[1], [0], [0], [1], [0, 0, 1, 1], [], []>} : vector<32x192xbf16>, vector<192x256xbf16>, vector<32x256xf32> -> vector<32x256xf32>
    %c2 = arith.constant 2 : index
    %c0_29 = arith.constant 0 : index
    %c0_30 = arith.constant 0 : index
    %56 = vector.load %arg7[%c2, %c0_29, %c0_30] : memref<3x32x192xbf16, #tpu.memory_space<vmem>>, vector<1x32x192xbf16>
    %57 = vector.shape_cast %56 : vector<1x32x192xbf16> to vector<32x192xbf16>
    %cst_31 = arith.constant dense<0.000000e+00> : vector<32x256xf32>
    %58 = tpu.matmul %57, %49, %cst_31 {dimension_numbers = #tpu.dot_dimension_numbers<[1], [0], [0], [1], [0, 0, 1, 1], [], []>} : vector<32x192xbf16>, vector<192x256xbf16>, vector<32x256xf32> -> vector<32x256xf32>
    %c0_i32_32 = arith.constant 0 : i32
    %59 = vector.broadcast %c0_i32_32 : i32 to vector<1x256xi32>
    %60 = arith.cmpi sgt, %32, %59 : vector<1x256xi32>
    %c1_i32_33 = arith.constant 1 : i32
    %61 = tpu.dynamic_rotate %52 by %c1_i32_33 dim 1 : vector<32x256xf32>, i32 -> vector<32x256xf32>
    %cst_34 = arith.constant 0.000000e+00 : f32
    %62 = vector.shape_cast %60 : vector<1x256xi1> to vector<1x256xi1>
    %63 = vector.broadcast %62 : vector<1x256xi1> to vector<32x256xi1>
    %64 = vector.broadcast %cst_34 : f32 to vector<32x256xf32>
    %65 = arith.select %63, %61, %64 : vector<32x256xi1>, vector<32x256xf32>
    %66 = arith.addf %55, %65 : vector<32x256xf32>
    %c15_i32 = arith.constant 15 : i32
    %67 = vector.broadcast %c15_i32 : i32 to vector<1x256xi32>
    %68 = arith.cmpi slt, %32, %67 : vector<1x256xi32>
    %c255_i32 = arith.constant 255 : i32
    %69 = tpu.dynamic_rotate %58 by %c255_i32 dim 1 : vector<32x256xf32>, i32 -> vector<32x256xf32>
    %cst_35 = arith.constant 0.000000e+00 : f32
    %70 = vector.shape_cast %68 : vector<1x256xi1> to vector<1x256xi1>
    %71 = vector.broadcast %70 : vector<1x256xi1> to vector<32x256xi1>
    %72 = vector.broadcast %cst_35 : f32 to vector<32x256xf32>
    %73 = arith.select %71, %69, %72 : vector<32x256xi1>, vector<32x256xf32>
    %74 = arith.addf %66, %73 : vector<32x256xf32>
    %c0_36 = arith.constant 0 : index
    %c0_37 = arith.constant 0 : index
    %75 = vector.load %arg8[%c0_36, %c0_37] : memref<32x1xf32, #tpu.memory_space<vmem>>, vector<32x1xf32>
    %76 = vector.broadcast %75 : vector<32x1xf32> to vector<32x256xf32>
    %77 = arith.addf %74, %76 : vector<32x256xf32>
    %cst_38 = arith.constant 0.000000e+00 : f32
    %78 = vector.broadcast %cst_38 : f32 to vector<32x256xf32>
    %79 = arith.maximumf %77, %78 : vector<32x256xf32>
    %c0_39 = arith.constant 0 : index
    %c0_40 = arith.constant 0 : index
    %c0_41 = arith.constant 0 : index
    %80 = vector.load %arg9[%c0_39, %c0_40, %c0_41] : memref<1x32x256xf32, #tpu.memory_space<vmem>>, vector<1x32x256xf32>
    %81 = vector.shape_cast %80 : vector<1x32x256xf32> to vector<32x256xf32>
    %82 = vector.shape_cast %79 : vector<32x256xf32> to vector<1x32x256xf32>
    tpu.vector_store %arg9[%c0_39, %c0_40, %c0_41], %82 {strides = array<i32>} : memref<1x32x256xf32, #tpu.memory_space<vmem>>, vector<1x32x256xf32>,
    return
  }
  func.func @transform_0(%arg0: i32) -> (i32, i32, i32) {
    %c0_i32 = arith.constant 0 : i32
    %c0_i32_0 = arith.constant 0 : i32
    %c0_i32_1 = arith.constant 0 : i32
    return %arg0, %c0_i32, %c0_i32_0 : i32, i32, i32
  }
  func.func @transform_1(%arg0: i32) -> (i32, i32) {
    %c0_i32 = arith.constant 0 : i32
    %c0_i32_0 = arith.constant 0 : i32
    %c0_i32_1 = arith.constant 0 : i32
    return %c0_i32, %c0_i32_0 : i32, i32
  }
  func.func @transform_2(%arg0: i32) -> (i32, i32) {
    %c0_i32 = arith.constant 0 : i32
    %c0_i32_0 = arith.constant 0 : i32
    %c0_i32_1 = arith.constant 0 : i32
    return %c0_i32, %c0_i32_0 : i32, i32
  }
  func.func @transform_3(%arg0: i32) -> (i32, i32) {
    %c0_i32 = arith.constant 0 : i32
    %c0_i32_0 = arith.constant 0 : i32
    %c0_i32_1 = arith.constant 0 : i32
    return %c0_i32, %c0_i32_0 : i32, i32
  }
  func.func @transform_4(%arg0: i32) -> (i32, i32) {
    %c0_i32 = arith.constant 0 : i32
    %c0_i32_0 = arith.constant 0 : i32
    %c0_i32_1 = arith.constant 0 : i32
    return %c0_i32, %c0_i32_0 : i32, i32
  }
  func.func @transform_5(%arg0: i32) -> (i32, i32) {
    %c0_i32 = arith.constant 0 : i32
    %c0_i32_0 = arith.constant 0 : i32
    %c0_i32_1 = arith.constant 0 : i32
    return %c0_i32, %c0_i32_0 : i32, i32
  }
  func.func @transform_6(%arg0: i32) -> (i32, i32, i32) {
    %c0_i32 = arith.constant 0 : i32
    %c0_i32_0 = arith.constant 0 : i32
    %c0_i32_1 = arith.constant 0 : i32
    %c0_i32_2 = arith.constant 0 : i32
    return %c0_i32, %c0_i32_0, %c0_i32_1 : i32, i32, i32
  }
  func.func @transform_7(%arg0: i32) -> (i32, i32) {
    %c0_i32 = arith.constant 0 : i32
    %c0_i32_0 = arith.constant 0 : i32
    %c0_i32_1 = arith.constant 0 : i32
    return %c0_i32, %c0_i32_0 : i32, i32
  }
  func.func @transform_8(%arg0: i32) -> (i32, i32, i32) {
    %c0_i32 = arith.constant 0 : i32
    %c0_i32_0 = arith.constant 0 : i32
    %c0_i32_1 = arith.constant 0 : i32
    return %arg0, %c0_i32, %c0_i32_0 : i32, i32, i32
  }
}

</mosaic_0001>

<bundles_post_ra>
// kernel: tpu_custom_call.1
= control target key start
LH: loop header
LB: loop body
LE: loop exit
PB: predicated region body
PF: predicated region fallthrough
CT: control target
= control target key end

     0   :  { %13 = vsyncpa [#allocation3], 0  ;;  %s2530_s0 = inlined_call_operand.vmem [shape: f32[2,32,256], index: 0, kind: input, shape index: {}]   ;;  %s2531_s1 = inlined_call_operand.vmem [shape: f32[256,64], index: 1, kind: input, shape index: {}]   ;;  %s2532_s2 = inlined_call_operand.vmem [shape: f32[64,256], index: 2, kind: input, shape index: {}]   ;;  %s2533_s3 = inlined_call_operand.vmem [shape: f32[32,32], index: 3, kind: input, shape index: {}]   ;;  %s2534_s4 = inlined_call_operand.vmem [shape: f32[32,1], index: 4, kind: input, shape index: {}]   ;;  %s2535_s5 = inlined_call_operand.vmem [shape: f32[32,64], index: 5, kind: input, shape index: {}]   ;;  %s2536_s6 = inlined_call_operand.vmem [shape: bf16[3,32,192], index: 6, kind: input, shape index: {}]   ;;  %s2537_s7 = inlined_call_operand.vmem [shape: f32[32,1], index: 7, kind: input, shape index: {}]   ;;  %s2538_s8 = inlined_call_operand.hbm [shape: f32[2,32,256], index: 8, kind: output, shape index: {}]  }
   0x1   :  { %15 = vsyncpa [#allocation3 + $0x1], 0  ;;  %s1764_s27 = smov 0   ;;  %s1766_s28 = smov 0  }
   0x2   :  { %s1768_s29 = smov 0   ;;  %s1770_s30 = smov 0  }
   0x3 LB: > { %s1785_s9 = sadd.s32 4294967295, %s1711_s30   ;;  %s1411_s10 = sadd.s32 4294967294, %s1711_s30   ;;  %s1711_s30 = sphi %s1770_s30, %s2552_s30   ;;  %s1707_s29 = sphi %s1768_s29, %s2551_s29   ;;  %s1703_s28 = sphi %s1766_s28, %s2550_s28   ;;  %s1699_s27 = sphi %s1764_s27, %s2549_s27  }
   0x4   : > { %s1789_s11 = sadd.s32 1, %s1711_s30   ;;  %s201_s12 = sadd.s32 1, %s1707_s29 }
   0x5   : > { %s198_s13 = ssub.s32 %s1711_s30, %s1789_s11  ;;  %p211_p0 = scmp.ne.s32.totalorder %s1707_s29, %s1703_s28 }
   0x6   : > { %p199_p1 = scmp.eq.s32.totalorder %s198_s13, 0  ;;  %p212_p2 = scmp.eq.s32.totalorder %s1785_s9, 1 }
   0x7   : > { %p217_p3 = scmp.ne.s32.totalorder %s1703_s28, %s1699_s27  ;;  %p218_p4 = scmp.eq.s32.totalorder %s1411_s10, 1 }
   0x8   : > { %s1800_s14 = scalar_select %p199_p1, %s1707_s29, %s201_s12  }
   0x9   : > { %p1802_p5 = por %p212_p2, %p211_p0  ;;  %p1806_p6 = por %p218_p4, %p217_p3 }
   0xa   : > { %p1414_p7 = scmp.ge.s32.totalorder %s1711_s30, 1  ;;  %p265_p8 = scmp.lt.s32.totalorder %s1711_s30, 3 }
   0xc   : > { %p266_p9 = pnand %p1414_p7, %p265_p8 }
   0xd   : > { %p299_p10 = scmp.lt.s32.totalorder (!%p266_p9), %s1785_s9, 1  ;;  %s1714_s26 = smov (!%p266_p9), 16  }
   0xe   : > { %269 = sbr.rel (%p266_p9) target bundleno = 975 (0x3cf), region = 52  ;;  %s1715_s10 = smov (!%p266_p9), 112  }
   0xf   : > { %s1717_s17 = smov (!%p266_p9), 127   ;;  %s296_s25 = sand.u32 (!%p266_p9), 1, %s1703_s28  }
  0x10   : > { %s1334_s21 = scalar_lea.sflag (!%p266_p9), [#allocation3], %s296_s25 }
  0x13   : > { %v328_v0 = vld [vmem:[%s2531_s1 + $0x78] sm:$0xff]  ;;  %v327_v2 = vld [vmem:[%s2531_s1 + $0x70] sm:$0xff]  ;;  %v326_v4 = vld [vmem:[%s2531_s1 + $0x68] sm:$0xff]  ;;  %s300_s22 = scalar_select %p299_p10, %s1785_s9, 1  ;;  %v1713_v42 = vmov 0   ;;  %vm431_vm0 = vcmask 261120  }
  0x14   : > { %v344_v1 = vld [vmem:[%s2531_s1 + $0xf8] sm:$0xff]  ;;  %345 = vmatpush.msra.mxu0 %v328_v0  ;;  %v343_v3 = vld [vmem:[%s2531_s1 + $0xf0] sm:$0xff]  ;;  %v342_v5 = vld [vmem:[%s2531_s1 + $0xe8] sm:$0xff]  ;;  %1566 = vset.pattern.permute.xlu0 %v1713_v42  ;;  %vm501_vm1 = vcmask 523264  }
  0x15   : > { %374 = vmatpush.msra.mxu1 %v344_v1  ;;  %v325_v6 = vld [vmem:[%s2531_s1 + $0x60] sm:$0xff]  ;;  %v324_v8 = vld [vmem:[%s2531_s1 + $0x58] sm:$0xff]  ;;  %v323_v10 = vld [vmem:[%s2531_s1 + $0x50] sm:$0xff]  ;;  %s1503_s18 = sshll.u32 %s300_s22, 6  ;;  %1567 = vset.pattern.permute.xlu1 %v1713_v42  ;;  %s1516_s22 = sshll.u32 %s1785_s9, 6 }
  0x16   : > { %346 = vmatpush.msra.mxu0 %v327_v2  ;;  %v341_v7 = vld [vmem:[%s2531_s1 + $0xe0] sm:$0xff]  ;;  %v340_v9 = vld [vmem:[%s2531_s1 + $0xd8] sm:$0xff]  ;;  %v339_v11 = vld [vmem:[%s2531_s1 + $0xd0] sm:$0xff]  ;;  %s303_s13 = scalar_lea.vmem %s2530_s0, %s1503_s18  ;;  %1648 = vset.pattern.permute.xlu2 %v1713_v42  ;;  %s1345_s19 = scalar_lea.hbm %s2538_s8, %s1516_s22 }
  0x17   : > { %375 = vmatpush.msra.mxu1 %v343_v3  ;;  %v322_v12 = vld [vmem:[%s2531_s1 + $0x48] sm:$0xff]  ;;  %v321_v14 = vld [vmem:[%s2531_s1 + $0x40] sm:$0xff]  ;;  %v320_v16 = vld [vmem:[%s2531_s1 + $0x38] sm:$0xff]  ;;  %s1348_s20 = sshll.u32 %s1345_s19, 4  ;;  %s1669_s22 = scalar_lea.hbm %s2538_s8, 128  ;;  %s1349_s20 = int_to_ptr.hbm [resolvable:$true] %s1348_s20 }
  0x18   : > { %347 = vmatpush.msra.mxu0 %v326_v4  ;;  %v338_v13 = vld [vmem:[%s2531_s1 + $0xc8] sm:$0xff]  ;;  %v337_v15 = vld [vmem:[%s2531_s1 + $0xc0] sm:$0xff]  ;;  %v336_v17 = vld [vmem:[%s2531_s1 + $0xb8] sm:$0xff]  ;;  %s1663_s18 = sshra.s32 %s1349_s20, 4  ;;  %s1664_s18 = int_to_ptr.hbm [resolvable:$true] %s1663_s18 }
  0x19   : > { %376 = vmatpush.msra.mxu1 %v342_v5  ;;  %v319_v18 = vld [vmem:[%s2531_s1 + $0x30] sm:$0xff]  ;;  %v318_v20 = vld [vmem:[%s2531_s1 + $0x28] sm:$0xff]  ;;  %v317_v22 = vld [vmem:[%s2531_s1 + $0x20] sm:$0xff]  ;;  %s1665_s23 = scalar_lea.hbm %s1664_s18, 64  ;;  %p1670_p0 = scmp.lt.s32.totalorder %s1664_s18, %s2538_s8 }
  0x1a   : > { %348 = vmatpush.msra.mxu0 %v325_v6  ;;  %v335_v19 = vld [vmem:[%s2531_s1 + $0xb0] sm:$0xff]  ;;  %v334_v21 = vld [vmem:[%s2531_s1 + $0xa8] sm:$0xff]  ;;  %v333_v23 = vld [vmem:[%s2531_s1 + $0xa0] sm:$0xff]  ;;  %p1666_p11 = scmp.ne.s32.totalorder %s1664_s18, %s1665_s23  ;;  %p1671_p1 = scmp.lt.s32.totalorder %s1669_s22, %s1665_s23 }
  0x1b   : > { %377 = vmatpush.msra.mxu1 %v341_v7  ;;  %v316_v24 = vld [vmem:[%s2531_s1 + $0x18] sm:$0xff]  ;;  %v315_v26 = vld [vmem:[%s2531_s1 + $0x10] sm:$0xff]  ;;  %v314_v28 = vld [vmem:[%s2531_s1 + $0x8] sm:$0xff] }
  0x1c   : > { %349 = vmatpush.msra.mxu0 %v324_v8  ;;  %v332_v25 = vld [vmem:[%s2531_s1 + $0x98] sm:$0xff]  ;;  %v331_v27 = vld [vmem:[%s2531_s1 + $0x90] sm:$0xff]  ;;  %v330_v29 = vld [vmem:[%s2531_s1 + $0x88] sm:$0xff]  ;;  %p1667_p12 = pnand %p1666_p11, %p1802_p5  ;;  %p1672_p2 = por %p1671_p1, %p1670_p0 }
  0x1d   : > { %378 = vmatpush.msra.mxu1 %v340_v9  ;;  %v313_v30 = vld [vmem:[%s2531_s1] sm:$0xff]  ;;  %v1915_v33 = vld [vmem:[%s303_s13 + $0x8] sm:$0xff]  ;;  %v1919_v34 = vld [vmem:[%s303_s13 + $0x10] sm:$0xff] }
  0x1e   : > { %350 = vmatpush.msra.mxu0 %v323_v10  ;;  %v329_v31 = vld [vmem:[%s2531_s1 + $0x80] sm:$0xff]  ;;  %v1921_v35 = vld [vmem:[%s303_s13 + $0x18] sm:$0xff]  ;;  %v1927_v37 = vld [vmem:[%s303_s13 + $0x28] sm:$0xff]  ;;  %p1668_p13 = pneg %p1667_p12 }
  0x1f   : > { %379 = vmatpush.msra.mxu1 %v339_v11  ;;  %v1913_v32 = vld [vmem:[%s303_s13] sm:$0xff]  ;;  %v1931_v38 = vld [vmem:[%s303_s13 + $0x30] sm:$0xff]  ;;  %v1933_v39 = vld [vmem:[%s303_s13 + $0x38] sm:$0xff] }
  0x20   : > { %351 = vmatpush.msra.mxu0 %v322_v12  ;;  %v1925_v36 = vld [vmem:[%s303_s13 + $0x20] sm:$0xff]  ;;  %v409_v46 = vld [vmem:[%s2534_s4 + $0x10] sm:$0xff]  ;;  %v408_v49 = vld [vmem:[%s2534_s4 + $0x8] sm:$0xff]  ;;  %s1716_s13 = smov 1   ;;  %p1673_p3 = pnand %p1672_p2, %p1668_p13 }
  0x21   : > { %380 = vmatpush.msra.mxu1 %v338_v13  ;;  %v407_v45 = vld [vmem:[%s2534_s4] sm:$0xff]  ;;  %423 = vperm.xlu1 %1567, %v409_v46   ;;  %v410_v50 = vld [vmem:[%s2534_s4 + $0x18] sm:$0xff]  ;;  %v405_v58 = vld [vmem:[%s2533_s3 + $0x10] sm:$0xff]  ;;  %v1568_v46 = vpack.i.bf16 %v1931_v38, %v1925_v36 }
  0x22   : > { %352 = vmatpush.msra.mxu0 %v321_v14  ;;  %413 = vperm.xlu0 %1566, %v407_v45   ;;  %v403_v57 = vld [vmem:[%s2533_s3] sm:$0xff]  ;;  %v404_v59 = vld [vmem:[%s2533_s3 + $0x8] sm:$0xff]  ;;  %v406_v60 = vld [vmem:[%s2533_s3 + $0x18] sm:$0xff]  ;;  %v1573_v45 = vpack.i.bf16 %v1933_v39, %v1927_v37 }
  0x23   : > { %381 = vmatpush.msra.mxu1 %v337_v15  ;;  %v499_v61 = vld [vmem:[%s2532_s2 + $0x70] sm:$0xff]  ;;  %v500_v62 = vld [vmem:[%s2532_s2 + $0x78] sm:$0xff]  ;;  %v497_v63 = vld [vmem:[%s2532_s2 + $0x60] sm:$0xff] }
  0x24   : > { %353 = vmatpush.msra.mxu0 %v320_v16  ;;  %v498_v0 = vld [vmem:[%s2532_s2 + $0x68] sm:$0xff]  ;;  %v495_v1 = vld [vmem:[%s2532_s2 + $0x50] sm:$0xff]  ;;  %v496_v2 = vld [vmem:[%s2532_s2 + $0x58] sm:$0xff] }
  0x25   : > { %382 = vmatpush.msra.mxu1 %v336_v17  ;;  %v493_v3 = vld [vmem:[%s2532_s2 + $0x40] sm:$0xff]  ;;  %v494_v4 = vld [vmem:[%s2532_s2 + $0x48] sm:$0xff]  ;;  %v491_v5 = vld [vmem:[%s2532_s2 + $0x30] sm:$0xff] }
  0x26   : > { %354 = vmatpush.msra.mxu0 %v319_v18  ;;  %v492_v6 = vld [vmem:[%s2532_s2 + $0x38] sm:$0xff]  ;;  %v489_v7 = vld [vmem:[%s2532_s2 + $0x20] sm:$0xff]  ;;  %v490_v8 = vld [vmem:[%s2532_s2 + $0x28] sm:$0xff] }
  0x27   : > { %383 = vmatpush.msra.mxu1 %v335_v19  ;;  %v487_v9 = vld [vmem:[%s2532_s2 + $0x10] sm:$0xff]  ;;  %v488_v10 = vld [vmem:[%s2532_s2 + $0x18] sm:$0xff]  ;;  %v485_v11 = vld [vmem:[%s2532_s2] sm:$0xff] }
  0x28   : > { %355 = vmatpush.msra.mxu0 %v318_v20  ;;  %v486_v12 = vld [vmem:[%s2532_s2 + $0x8] sm:$0xff]  ;;  %v477_v16 = vld [vmem:[%s2535_s5] sm:$0xff] }
  0x29   : > { %384 = vmatpush.msra.mxu1 %v334_v21  ;;  %428 = vperm.xlu1 %1567, %v410_v50  }
  0x2a   : > { %356 = vmatpush.msra.mxu0 %v317_v22  ;;  %418 = vperm.xlu0 %1566, %v408_v49  }
  0x2b   : > { %385 = vmatpush.msra.mxu1 %v333_v23 }
  0x2c   : > { %357 = vmatpush.msra.mxu0 %v316_v24  ;;  %v478_v24 = vld [vmem:[%s2535_s5 + $0x8] sm:$0xff] }
  0x2d   : > { %386 = vmatpush.msra.mxu1 %v332_v25 }
  0x2e   : > { %358 = vmatpush.msra.mxu0 %v315_v26 }
  0x2f   : > { %387 = vmatpush.msra.mxu1 %v331_v27 }
  0x30   : > { %359 = vmatpush.msra.mxu0 %v314_v28 }
  0x31   : > { %388 = vmatpush.msra.mxu1 %v330_v29  ;;  %v479_v29 = vld [vmem:[%s2535_s5 + $0x10] sm:$0xff]  ;;  %1574 = vrot.lane.b32.xlu1 %v1573_v45, %s1714_s26 }
  0x32   : > { %360 = vmatpush.msra.mxu0 %v313_v30  ;;  %1569 = vrot.lane.b32.xlu0 %v1568_v46, %s1714_s26 }
  0x33   : > { %389 = vmatpush.msra.mxu1 %v329_v31  ;;  %361 = vmatmul.f32.vlgmr.msra.gmra.mxu0 %v1913_v32 }
  0x34   : > { %390 = vmatmul.f32.vlgmr.msra.gmra.mxu1 %v1915_v33 }
  0x3b   : > { %364 = vmatmul.f32.gmra.mxu0 %v1919_v34 }
  0x3c   : > { %393 = vmatmul.f32.gmra.mxu1 %v1921_v35 }
  0x43   : > { %367 = vmatmul.f32.gmra.mxu0 %v1925_v36 }
  0x44   : > { %396 = vmatmul.f32.gmra.mxu1 %v1927_v37 }
  0x4b   : > { %370 = vmatmul.f32.gmra.mxu0 %v1931_v38 }
  0x4c   : > { %399 = vmatmul.f32.gmra.mxu1 %v1933_v39 }
  0x93   : > { %v424_v20 = vpop.permute.xlu1 %423 }
  0x94   : > { %v414_v13 = vpop.permute.xlu0 %413 }
  0x9b   : > { %v429_v30 = vpop.permute.xlu1 %428 }
  0x9c   : > { %v419_v19 = vpop.permute.xlu0 %418 }
  0xb0   : > { %v362_v40 = vpop.f32.mrf.mxu0 }
  0xb1   : > { %v391_v41 = vpop.f32.mrf.mxu1 }
  0xb2   : > { %v392_v56 = vadd.f32 %v391_v41, %v362_v40 }
  0xb8   : > { %v365_v43 = vpop.f32.mrf.mxu0 }
  0xb9   : > { %v394_v44 = vpop.f32.mrf.mxu1 }
  0xba   : > { %v395_v55 = vadd.f32 %v394_v44, %v365_v43  ;;  %v480_v43 = vld [vmem:[%s2535_s5 + $0x18] sm:$0xff] }
  0xc0   : > { %v368_v47 = vpop.f32.mrf.mxu0 }
  0xc1   : > { %v397_v48 = vpop.f32.mrf.mxu1 }
  0xc2   : > { %v398_v54 = vadd.f32 %v397_v48, %v368_v47 }
  0xc8   : > { %v371_v51 = vpop.f32.mrf.mxu0 }
  0xc9   : > { %v400_v52 = vpop.f32.mrf.mxu1 }
  0xca   : > { %v401_v53 = vadd.f32 %v400_v52, %v371_v51 }
  0xcc   : > { %456 = vmatpush.msra.mxu2 %v401_v53  ;;  %1517 = vmatpush.msra.mxu3 %v401_v53 }
  0xce   : > { %457 = vmatpush.msra.mxu2 %v398_v54  ;;  %1518 = vmatpush.msra.mxu3 %v398_v54 }
  0xd0   : > { %458 = vmatpush.msra.mxu2 %v395_v55  ;;  %1519 = vmatpush.msra.mxu3 %v395_v55 }
  0xd2   : > { %459 = vmatpush.msra.mxu2 %v392_v56  ;;  %1520 = vmatpush.msra.mxu3 %v392_v56 }
  0xd3   : > { %1418 = vmatmul.msk.f32.vlgmr.msra.gmra.mxu2 %vm431_vm0, %v403_v57  ;;  %1420 = vmatmul.msk.f32.vlgmr.msra.gmra.mxu3 %vm431_vm0, %v405_v58 }
  0xd4   : > { %522 = vmatpush.msrb.mxu3 %v499_v61  ;;  %551 = vmatpush.msrb.mxu2 %v500_v62 }
  0xd6   : > { %523 = vmatpush.msrb.mxu3 %v497_v63  ;;  %552 = vmatpush.msrb.mxu2 %v498_v0 }
  0xd8   : > { %524 = vmatpush.msrb.mxu3 %v495_v1  ;;  %553 = vmatpush.msrb.mxu2 %v496_v2 }
  0xda   : > { %525 = vmatpush.msrb.mxu3 %v493_v3  ;;  %554 = vmatpush.msrb.mxu2 %v494_v4 }
  0xdb   : > { %1419 = vmatmul.msk.f32.gmra.mxu2 %vm431_vm0, %v404_v59  ;;  %1421 = vmatmul.msk.f32.gmra.mxu3 %vm431_vm0, %v406_v60 }
  0xdc   : > { %526 = vmatpush.msrb.mxu3 %v491_v5  ;;  %555 = vmatpush.msrb.mxu2 %v492_v6 }
  0xde   : > { %527 = vmatpush.msrb.mxu3 %v489_v7  ;;  %556 = vmatpush.msrb.mxu2 %v490_v8  ;;  %v1628_v7 = vpack.i.bf16 %v1919_v34, %v1913_v32 }
  0xe0   : > { %528 = vmatpush.msrb.mxu3 %v487_v9  ;;  %557 = vmatpush.msrb.mxu2 %v488_v10 }
  0xe2   : > { %529 = vmatpush.msrb.mxu3 %v485_v11  ;;  %558 = vmatpush.msrb.mxu2 %v486_v12  ;;  %v1643_v12 = vpack.i.bf16 %v1921_v35, %v1915_v33 }
 0x156   : > { %v461_v14 = vpop.f32.mrf.mxu2  ;;  %v467_v22 = vpop.f32.mrf.mxu3 }
 0x157   : > { %v462_v15 = vadd.f32 %v461_v14, %v414_v13  ;;  %v468_v26 = vadd.f32 %v467_v22, %v424_v20  ;;  %v1285_v13 = vld [vmem:[%s2537_s7] sm:$0xff]  ;;  %v751_v14 = vpack.c.bf16 %v1927_v37, %v1925_v36 }
 0x159   : > { %v473_v17 = vmax.f32 %v462_v15, 0.0  ;;  %v475_v28 = vmax.f32 %v468_v26, 0.0  ;;  %v752_v15 = vpack.c.bf16 %v1933_v39, %v1931_v38  ;;  %v818_v20 = vunpack.c.h.b16 %v751_v14  ;;  %v1575_v26 = vpop.permute.xlu1 %1574 }
 0x15a   : > { %v572_v39 = vlaneseq }
 0x15b   : > { %v481_v18 = vmul.f32 %v477_v16, %v473_v17  ;;  %v483_v40 = vmul.f32 %v479_v29, %v475_v28  ;;  %v749_v16 = vpack.c.bf16 %v1915_v33, %v1913_v32  ;;  %v750_v17 = vpack.c.bf16 %v1921_v35, %v1919_v34 }
 0x15c   : > { %v1577_v29 = vunpack.i.h.bf16 %v1575_v26 }
 0x15d   : > { %1422 = vmatmul.msk.f32.vlgmr.msrb.gmra.mxu3 %vm501_vm1, %v481_v18  ;;  %1426 = vmatmul.msk.f32.vlgmr.msrb.gmra.mxu2 %vm501_vm1, %v481_v18  ;;  %v817_v18 = vunpack.c.l.b16 %v751_v14  ;;  %v813_v36 = vunpack.c.l.b16 %v749_v16  ;;  %v815_v37 = vunpack.c.l.b16 %v750_v17  ;;  %v816_v38 = vunpack.c.h.b16 %v750_v17 }
 0x15e   : > { %v464_v21 = vpop.f32.mrf.mxu2  ;;  %v470_v31 = vpop.f32.mrf.mxu3 }
 0x15f   : > { %v465_v23 = vadd.f32 %v464_v21, %v419_v19  ;;  %v471_v41 = vadd.f32 %v470_v31, %v429_v30  ;;  %v819_v19 = vunpack.c.l.b16 %v752_v15  ;;  %v820_v21 = vunpack.c.h.b16 %v752_v15 }
 0x160   : > { %v2082_v33 = vpack.c.b16 %v815_v37, %v813_v36  ;;  %v1576_v30 = vunpack.i.l.bf16 %v1575_v26 }
 0x161   : > { %v474_v25 = vmax.f32 %v465_v23, 0.0  ;;  %v476_v42 = vmax.f32 %v471_v41, 0.0  ;;  %v2076_v22 = vpack.c.b16 %v819_v19, %v817_v18  ;;  %v2078_v23 = vpack.c.b16 %v820_v21, %v818_v20 }
 0x163   : > { %v482_v27 = vmul.f32 %v478_v24, %v474_v25  ;;  %v484_v44 = vmul.f32 %v480_v43, %v476_v42  ;;  %v814_v24 = vunpack.c.h.b16 %v749_v16  ;;  %v1570_v25 = vpop.permute.xlu0 %1569 }
 0x164   : > { %v1572_v31 = vunpack.i.h.bf16 %v1570_v25 }
 0x165   : > { %1423 = vmatmul.msk.f32.gmra.mxu3 %vm501_vm1, %v482_v27  ;;  %1427 = vmatmul.msk.f32.gmra.mxu2 %vm501_vm1, %v482_v27  ;;  %v2084_v34 = vpack.c.b16 %v816_v38, %v814_v24  ;;  %v2090_v27 = vand.u32 127, %v572_v39 }
 0x167   : > { %vm633_vm2 = vcmp.lt.s32.totalorder %v2090_v27, 16  ;;  %vm599_vm3 = vcmp.ge.s32.totalorder %v2090_v27, 16  ;;  %vm704_vm4 = vcmp.lt.s32.totalorder %v2090_v27, 112  ;;  %vm1117_vm6 = vcmp.lt.s32.totalorder %v2090_v27, 1 }
 0x168   : > { %v645_v41 = vsel %vm633_vm2, %v1577_v29, %v1572_v31  ;;  %vm1256_vm9 = vcmp.lt.s32.totalorder %v2090_v27, 127 }
 0x16d   : > { %1424 = vmatmul.msk.f32.gmra.mxu3 %vm501_vm1, %v483_v40  ;;  %1428 = vmatmul.msk.f32.gmra.mxu2 %vm501_vm1, %v483_v40  ;;  %v1571_v40 = vunpack.i.l.bf16 %v1570_v25 }
 0x16f   : > { %v644_v42 = vsel %vm633_vm2, %v1576_v30, %v1571_v40 }
 0x175   : > { %1425 = vmatmul.msk.f32.gmra.mxu3 %vm501_vm1, %v484_v44  ;;  %1429 = vmatmul.msk.f32.gmra.mxu2 %vm501_vm1, %v484_v44 }
 0x1e0   : > { %v531_v47 = vpop.f32.mrf.mxu3  ;;  %v560_v48 = vpop.f32.mrf.mxu2 }
 0x1e1   : > { %v753_v62 = vpack.c.bf16 %v560_v48, %v531_v47 }
 0x1e3   : > { %v821_v8 = vunpack.c.l.b16 %v753_v62  ;;  %v822_v9 = vunpack.c.h.b16 %v753_v62 }
 0x1e8   : > { %v534_v49 = vpop.f32.mrf.mxu3  ;;  %v563_v50 = vpop.f32.mrf.mxu2 }
 0x1e9   : > { %v1588_v51 = vpack.i.bf16 %v534_v49, %v531_v47  ;;  %v1583_v52 = vpack.i.bf16 %v563_v50, %v560_v48  ;;  %v754_v60 = vpack.c.bf16 %v563_v50, %v534_v49  ;;  %v637_v49 = vsel %vm633_vm2, %v1572_v31, %v1577_v29 }
 0x1ea   : > { %v636_v50 = vsel %vm633_vm2, %v1571_v40, %v1576_v30 }
 0x1eb   : > { %1584 = vrot.lane.b32.xlu0 %v1583_v52, %s1714_s26  ;;  %1589 = vrot.lane.b32.xlu1 %v1588_v51, %s1715_s10  ;;  %v823_v3 = vunpack.c.l.b16 %v754_v60  ;;  %v824_v6 = vunpack.c.h.b16 %v754_v60  ;;  %v2111_v60 = vadd.s32 128, %v2090_v27 }
 0x1ec   : > { %1579 = vrot.lane.b32.xlu2 %v1588_v51, %s1714_s26 }
 0x1ed   : > { %v2050_v10 = vpack.c.b16 %v823_v3, %v821_v8  ;;  %v2054_v11 = vpack.c.b16 %v824_v6, %v822_v9  ;;  %vm671_vm5 = vcmp.lt.s32.totalorder %v2111_v60, 240 }
 0x1f0   : > { %v537_v53 = vpop.f32.mrf.mxu3  ;;  %v566_v54 = vpop.f32.mrf.mxu2 }
 0x1f1   : > { %v755_v55 = vpack.c.bf16 %v566_v54, %v537_v53 }
 0x1f3   : > { %v825_v63 = vunpack.c.l.b16 %v755_v55  ;;  %v826_v0 = vunpack.c.h.b16 %v755_v55 }
 0x1f4   : > { %1594 = vrot.lane.b32.xlu2 %v1583_v52, %s1715_s10 }
 0x1f8   : > { %v540_v56 = vpop.f32.mrf.mxu3  ;;  %v569_v57 = vpop.f32.mrf.mxu2 }
 0x1f9   : > { %v1613_v58 = vpack.i.bf16 %v540_v56, %v537_v53  ;;  %v1623_v59 = vpack.i.bf16 %v569_v57, %v566_v54  ;;  %v756_v61 = vpack.c.bf16 %v569_v57, %v540_v56  ;;  %v660_v53 = vsel %vm599_vm3, %v645_v41, 0.0 }
 0x1fa   : > { %v658_v54 = vsel %vm599_vm3, %v644_v42, 0.0  ;;  %v744_v17 = vpack.c.bf16 %v637_v49, %v660_v53 }
 0x1fb   : > { %1624 = vrot.lane.b32.xlu1 %v1623_v59, %s1715_s10  ;;  %1614 = vrot.lane.b32.xlu0 %v1613_v58, %s1715_s10  ;;  %v827_v1 = vunpack.c.l.b16 %v756_v61  ;;  %v828_v2 = vunpack.c.h.b16 %v756_v61  ;;  %v743_v20 = vpack.c.bf16 %v636_v50, %v658_v54 }
 0x1fc   : > { %1599 = vrot.lane.b32.xlu2 %v1613_v58, %s1714_s26  ;;  %v779_v40 = vunpack.c.l.b16 %v744_v17  ;;  %v780_v50 = vunpack.c.h.b16 %v744_v17 }
 0x1fd   : > { %v2042_v4 = vpack.c.b16 %v827_v1, %v825_v63  ;;  %v2044_v5 = vpack.c.b16 %v828_v2, %v826_v0  ;;  %v777_v31 = vunpack.c.l.b16 %v743_v20  ;;  %v778_v49 = vunpack.c.h.b16 %v743_v20 }
 0x1ff   : > { %913 = vmatpush.bf16.msra.mxu3 %v2042_v4  ;;  %951 = vmatpush.bf16.msrb.mxu1 %v2044_v5 }
 0x203   : > { %1629 = vrot.lane.b32.xlu1 %v1628_v7, %s1714_s26  ;;  %1619 = vrot.lane.b32.xlu0 %v1573_v45, %s1715_s10 }
 0x204   : > { %1604 = vrot.lane.b32.xlu2 %v1623_v59, %s1714_s26  ;;  %914 = vmatpush.bf16.msra.mxu3 %v2050_v10 }
 0x205   : > { %952 = vmatpush.bf16.msrb.mxu1 %v2054_v11 }
 0x208   : > { %915 = vmatpush.bf16.msra.mxu3 %v2076_v22 }
 0x209   : > { %953 = vmatpush.bf16.msrb.mxu1 %v2078_v23 }
 0x20b   : > { %1644 = vrot.lane.b32.xlu1 %v1643_v12, %s1715_s10  ;;  %1639 = vrot.lane.b32.xlu0 %v1628_v7, %s1715_s10 }
 0x20c   : > { %1609 = vrot.lane.b32.xlu2 %v1568_v46, %s1715_s10  ;;  %916 = vmatpush.bf16.msra.mxu3 %v2082_v33  ;;  %s1415_s10 = sshll.u32 %s296_s25, 6 }
 0x20d   : > { %954 = vmatpush.bf16.msrb.mxu1 %v2084_v34  ;;  %s2433_s12 = scalar_lea.vmem [#allocation2], %s1415_s10 }
 0x20e   : > { %s1346_s9 = sshll.u32 %s2433_s12, 4  ;;  %s1347_s9 = int_to_ptr.vmem [resolvable:$true] %s1346_s9 }
 0x213   : > { %1291 = vperm.xlu0 %1566, %v1285_v13  }
 0x214   : > { %1634 = vrot.lane.b32.xlu2 %v1643_v12, %s1714_s26 }
 0x246   : > { %v1580_v32 = vpop.permute.xlu2 %1579 }
 0x247   : > { %v1582_v44 = vunpack.i.h.bf16 %v1580_v32  ;;  %v1581_v45 = vunpack.i.l.bf16 %v1580_v32 }
 0x24e   : > { %v2088_v35 = vpop.permute.xlu2 %1594 }
 0x24f   : > { %v1597_v7 = vunpack.i.h.bf16 %v2088_v35  ;;  %v1596_v8 = vunpack.i.l.bf16 %v2088_v35 }
 0x256   : > { %v1600_v28 = vpop.permute.xlu2 %1599 }
 0x257   : > { %v1602_v58 = vunpack.i.h.bf16 %v1600_v28  ;;  %v1601_v59 = vunpack.i.l.bf16 %v1600_v28 }
 0x25d   : > { %v1585_v43 = vpop.permute.xlu0 %1584  ;;  %v1590_v57 = vpop.permute.xlu1 %1589 }
 0x25e   : > { %v1587_v46 = vunpack.i.h.bf16 %v1585_v43  ;;  %v1586_v47 = vunpack.i.l.bf16 %v1585_v43  ;;  %v1605_v48 = vpop.permute.xlu2 %1604  ;;  %v1592_v1 = vunpack.i.h.bf16 %v1590_v57  ;;  %v1591_v2 = vunpack.i.l.bf16 %v1590_v57 }
 0x25f   : > { %v1607_v51 = vunpack.i.h.bf16 %v1605_v48  ;;  %v1606_v52 = vunpack.i.l.bf16 %v1605_v48 }
 0x260   : > { %v646_v55 = vsel %vm633_vm2, %v1586_v47, %v1581_v45  ;;  %v647_v56 = vsel %vm633_vm2, %v1587_v46, %v1582_v44  ;;  %v638_v61 = vsel %vm633_vm2, %v1581_v45, %v1586_v47  ;;  %v639_v62 = vsel %vm633_vm2, %v1582_v44, %v1587_v46 }
 0x261   : > { %v662_v63 = vsel %vm599_vm3, %v646_v55, 0.0  ;;  %v664_v0 = vsel %vm599_vm3, %v647_v56, 0.0  ;;  %v640_v3 = vsel %vm633_vm2, %v1601_v59, %v1606_v52  ;;  %v641_v6 = vsel %vm633_vm2, %v1602_v58, %v1607_v51 }
 0x262   : > { %v648_v9 = vsel %vm633_vm2, %v1606_v52, %v1601_v59  ;;  %v649_v12 = vsel %vm633_vm2, %v1607_v51, %v1602_v58  ;;  %v745_v13 = vpack.c.bf16 %v638_v61, %v662_v63  ;;  %v746_v14 = vpack.c.bf16 %v639_v62, %v664_v0 }
 0x263   : > { %v666_v15 = vsel %vm599_vm3, %v648_v9, 0.0  ;;  %v668_v16 = vsel %vm599_vm3, %v649_v12, 0.0  ;;  %v717_v21 = vsel %vm704_vm4, %v1596_v8, %v1591_v2  ;;  %v718_v36 = vsel %vm704_vm4, %v1597_v7, %v1592_v1 }
 0x264   : > { %v747_v18 = vpack.c.bf16 %v640_v3, %v666_v15  ;;  %v748_v19 = vpack.c.bf16 %v641_v6, %v668_v16  ;;  %v781_v39 = vunpack.c.l.b16 %v745_v13  ;;  %v783_v25 = vunpack.c.l.b16 %v746_v14 }
 0x265   : > { %v782_v26 = vunpack.c.h.b16 %v745_v13  ;;  %v784_v28 = vunpack.c.h.b16 %v746_v14  ;;  %v709_v41 = vsel %vm704_vm4, %v1591_v2, %v1596_v8  ;;  %v710_v42 = vsel %vm704_vm4, %v1592_v1, %v1597_v7 }
 0x266   : > { %v785_v37 = vunpack.c.l.b16 %v747_v18  ;;  %v787_v24 = vunpack.c.l.b16 %v748_v19  ;;  %v786_v38 = vunpack.c.h.b16 %v747_v18  ;;  %v788_v32 = vunpack.c.h.b16 %v748_v19  ;;  %v2141_v35 = vpop.permute.xlu2 %1609 }
 0x267   : > { %v734_v43 = vsel %vm671_vm5, %v717_v21, 0.0  ;;  %v736_v44 = vsel %vm671_vm5, %v718_v36, 0.0  ;;  %v2157_v45 = vpack.c.b16 %v783_v25, %v781_v39  ;;  %v2159_v46 = vpack.c.b16 %v784_v28, %v782_v26 }
 0x268   : > { %v2143_v29 = vpack.c.b16 %v787_v24, %v785_v37  ;;  %v2145_v30 = vpack.c.b16 %v788_v32, %v786_v38  ;;  %v761_v55 = vpack.c.bf16 %v734_v43, %v709_v41  ;;  %v762_v56 = vpack.c.bf16 %v736_v44, %v710_v42 }
 0x269   : > { %v2175_v1 = vpack.c.b16 %v779_v40, %v777_v31  ;;  %v2177_v2 = vpack.c.b16 %v780_v50, %v778_v49  ;;  %v1612_v7 = vunpack.i.h.bf16 %v2141_v35  ;;  %v1611_v8 = vunpack.i.l.bf16 %v2141_v35 }
 0x26a   : > { %917 = vmatpush.bf16.msra.mxu3 %v2143_v29  ;;  %955 = vmatpush.bf16.msrb.mxu1 %v2145_v30  ;;  %v861_v13 = vunpack.c.l.b16 %v761_v55  ;;  %v863_v14 = vunpack.c.l.b16 %v762_v56  ;;  %v862_v35 = vunpack.c.h.b16 %v761_v55  ;;  %v864_v39 = vunpack.c.h.b16 %v762_v56 }
 0x26d   : > { %v1625_v47 = vpop.permute.xlu1 %1624  ;;  %v1615_v48 = vpop.permute.xlu0 %1614 }
 0x26e   : > { %v1627_v51 = vunpack.i.h.bf16 %v1625_v47  ;;  %v1626_v52 = vunpack.i.l.bf16 %v1625_v47  ;;  %v1617_v53 = vunpack.i.h.bf16 %v1615_v48  ;;  %v1616_v54 = vunpack.i.l.bf16 %v1615_v48  ;;  %918 = vmatpush.bf16.msra.mxu3 %v2157_v45  ;;  %956 = vmatpush.bf16.msrb.mxu1 %v2159_v46  ;;  %v1635_v3 = vpop.permute.xlu2 %1634 }
 0x26f   : > { %v1637_v18 = vunpack.i.h.bf16 %v1635_v3  ;;  %v1636_v19 = vunpack.i.l.bf16 %v1635_v3 }
 0x270   : > { %v712_v57 = vsel %vm704_vm4, %v1617_v53, %v1627_v51  ;;  %v720_v58 = vsel %vm704_vm4, %v1627_v51, %v1617_v53  ;;  %v711_v59 = vsel %vm704_vm4, %v1616_v54, %v1626_v52  ;;  %v719_v62 = vsel %vm704_vm4, %v1626_v52, %v1616_v54 }
 0x271   : > { %v740_v61 = vsel %vm671_vm5, %v720_v58, 0.0  ;;  %v738_v0 = vsel %vm671_vm5, %v719_v62, 0.0  ;;  %v2211_v52 = vpack.c.b16 %v863_v14, %v861_v13  ;;  %v2213_v53 = vpack.c.b16 %v864_v39, %v862_v35 }
 0x272   : > { %v764_v63 = vpack.c.bf16 %v740_v61, %v712_v57  ;;  %v763_v6 = vpack.c.bf16 %v738_v0, %v711_v59  ;;  %919 = vmatpush.bf16.msra.mxu3 %v2175_v1  ;;  %957 = vmatpush.bf16.msrb.mxu1 %v2177_v2 }
 0x274   : > { %v868_v9 = vunpack.c.h.b16 %v764_v63  ;;  %v867_v12 = vunpack.c.l.b16 %v764_v63  ;;  %v866_v15 = vunpack.c.h.b16 %v763_v6  ;;  %v865_v20 = vunpack.c.l.b16 %v763_v6 }
 0x275   : > { %v1630_v16 = vpop.permute.xlu1 %1629  ;;  %v1620_v17 = vpop.permute.xlu0 %1619 }
 0x276   : > { %v1632_v21 = vunpack.i.h.bf16 %v1630_v16  ;;  %v1631_v36 = vunpack.i.l.bf16 %v1630_v16  ;;  %v1622_v37 = vunpack.i.h.bf16 %v1620_v17  ;;  %v1621_v24 = vunpack.i.l.bf16 %v1620_v17  ;;  %v1505_v16 = vld [vmem:[%s2536_s6 + $0x4] sm:$0xf0] }
 0x277   : > { %v2183_v38 = vpack.c.b16 %v867_v12, %v865_v20  ;;  %v2185_v32 = vpack.c.b16 %v868_v9, %v866_v15  ;;  %v1432_v15 = vld [vmem:[%s2536_s6] sm:$0xf] }
 0x278   : > { %v707_v25 = vsel %vm704_vm4, %v1611_v8, %v1621_v24  ;;  %v708_v26 = vsel %vm704_vm4, %v1612_v7, %v1622_v37  ;;  %v715_v28 = vsel %vm704_vm4, %v1621_v24, %v1611_v8  ;;  %v716_v31 = vsel %vm704_vm4, %v1622_v37, %v1612_v7 }
 0x279   : > { %v730_v40 = vsel %vm671_vm5, %v715_v28, 0.0  ;;  %v732_v41 = vsel %vm671_vm5, %v716_v31, 0.0  ;;  %v635_v42 = vsel %vm633_vm2, %v1632_v21, %v1637_v18  ;;  %v643_v43 = vsel %vm633_vm2, %v1637_v18, %v1632_v21  ;;  %936 = vmatpush.bf16.msrb.mxu0 %v2183_v38  ;;  %974 = vmatpush.bf16.msra.mxu2 %v2185_v32 }
 0x27a   : > { %v759_v44 = vpack.c.bf16 %v730_v40, %v707_v25  ;;  %v760_v47 = vpack.c.bf16 %v732_v41, %v708_v26  ;;  %v656_v48 = vsel %vm599_vm3, %v643_v43, 0.0  ;;  %v634_v49 = vsel %vm633_vm2, %v1631_v36, %v1636_v19  ;;  %v1504_v43 = vld [vmem:[%s2536_s6 + $0x4] sm:$0xf] }
 0x27b   : > { %v742_v50 = vpack.c.bf16 %v635_v42, %v656_v48  ;;  %v642_v51 = vsel %vm633_vm2, %v1636_v19, %v1631_v36  ;;  %v1433_v25 = vor.u32 %v1505_v16, %v1432_v15  ;;  %v1440_v48 = vld [vmem:[%s2536_s6 + $0x10] sm:$0xf] }
 0x27c   : > { %v654_v54 = vsel %vm599_vm3, %v642_v51, 0.0  ;;  %v857_v55 = vunpack.c.l.b16 %v759_v44  ;;  %v859_v56 = vunpack.c.l.b16 %v760_v47  ;;  %v858_v57 = vunpack.c.h.b16 %v759_v44  ;;  %v1434_v44 = vld [vmem:[%s2536_s6 + $0x8] sm:$0xf0]  ;;  %v1506_v51 = vld [vmem:[%s2536_s6 + $0x14] sm:$0xf] }
 0x27d   : > { %v741_v58 = vpack.c.bf16 %v634_v49, %v654_v54  ;;  %937 = vmatpush.bf16.msrb.mxu0 %v2211_v52  ;;  %975 = vmatpush.bf16.msra.mxu2 %v2213_v53  ;;  %v1645_v59 = vpop.permute.xlu1 %1644  ;;  %v1640_v61 = vpop.permute.xlu0 %1639  ;;  %v775_v62 = vunpack.c.l.b16 %v742_v50  ;;  %v776_v63 = vunpack.c.h.b16 %v742_v50  ;;  %v860_v0 = vunpack.c.h.b16 %v760_v47  ;;  %v1507_v49 = vld [vmem:[%s2536_s6 + $0x14] sm:$0xf0]  ;;  %v1442_v54 = vld [vmem:[%s2536_s6 + $0x18] sm:$0xf0] }
 0x27e   : > { %v1647_v3 = vunpack.i.h.bf16 %v1645_v59  ;;  %v1646_v6 = vunpack.i.l.bf16 %v1645_v59  ;;  %v1642_v7 = vunpack.i.h.bf16 %v1640_v61  ;;  %v1641_v8 = vunpack.i.l.bf16 %v1640_v61  ;;  %v1490_v61 = vld [vmem:[%s2536_s6 + $0x38] sm:$0xf0] }
 0x27f   : > { %v773_v9 = vunpack.c.l.b16 %v741_v58  ;;  %v774_v12 = vunpack.c.h.b16 %v741_v58  ;;  %v2219_v13 = vpack.c.b16 %v859_v56, %v857_v55  ;;  %v2221_v14 = vpack.c.b16 %v860_v0, %v858_v57  ;;  %v1488_v56 = vld [vmem:[%s2536_s6 + $0x30] sm:$0xf]  ;;  %v1511_v57 = vld [vmem:[%s2536_s6 + $0x34] sm:$0xf0]  ;;  %v1510_v58 = vld [vmem:[%s2536_s6 + $0x34] sm:$0xf] }
 0x280   : > { %v706_v17 = vsel %vm704_vm4, %v1642_v7, %v1647_v3  ;;  %v714_v18 = vsel %vm704_vm4, %v1647_v3, %v1642_v7  ;;  %v705_v19 = vsel %vm704_vm4, %v1641_v8, %v1646_v6  ;;  %v713_v20 = vsel %vm704_vm4, %v1646_v6, %v1641_v8 }
 0x281   : > { %v728_v21 = vsel %vm671_vm5, %v714_v18, 0.0  ;;  %v726_v36 = vsel %vm671_vm5, %v713_v20, 0.0  ;;  %v2241_v37 = vpack.c.b16 %v775_v62, %v773_v9  ;;  %v2243_v24 = vpack.c.b16 %v776_v63, %v774_v12  ;;  %938 = vmatpush.bf16.msrb.mxu0 %v2219_v13  ;;  %976 = vmatpush.bf16.msra.mxu2 %v2221_v14 }
 0x282   : > { %v758_v35 = vpack.c.bf16 %v728_v21, %v706_v17  ;;  %v757_v39 = vpack.c.bf16 %v726_v36, %v705_v19  ;;  %v1437_v47 = vor.u32 %v1504_v43, %v1434_v44  ;;  %v1441_v50 = vor.u32 %v1507_v49, %v1440_v48 }
 0x283   : > { %920 = vmatpush.bf16.msra.mxu3 %v2241_v37  ;;  %958 = vmatpush.bf16.msrb.mxu1 %v2243_v24  ;;  %v1445_v55 = vor.u32 %v1506_v51, %v1442_v54  ;;  %v1489_v59 = vor.u32 %v1511_v57, %v1488_v56  ;;  %v1493_v62 = vor.u32 %v1510_v58, %v1490_v61  ;;  %v586_v56 = vand.u32 15, %v2111_v60 }
 0x284   : > { %v853_v26 = vunpack.c.l.b16 %v757_v39  ;;  %v855_v28 = vunpack.c.l.b16 %v758_v35  ;;  %v854_v31 = vunpack.c.h.b16 %v757_v39  ;;  %v856_v40 = vunpack.c.h.b16 %v758_v35 }
 0x285   : > { %vm2401_vm8 = vcmp.gt.s32.totalorder %v586_v56, 0  ;;  %vm2414_vm11 = vcmp.lt.s32.totalorder %v586_v56, 15 }
 0x286   : > { %921 = vmatmul.bf16.vlgmr.msra.gmra.mxu3 %v1433_v25  ;;  %v869_v41 = vpack.c.b16 %v855_v28, %v853_v26  ;;  %v870_v42 = vpack.c.b16 %v856_v40, %v854_v31  ;;  %959 = vmatmul.bf16.vlgmr.msrb.gmra.mxu1 %v1433_v25 }
 0x287   : > { %1023 = vmatpush.bf16.msrb.mxu3 %v2042_v4  ;;  %1061 = vmatpush.bf16.msra.mxu1 %v2044_v5 }
 0x288   : > { %939 = vmatpush.bf16.msrb.mxu0 %v869_v41  ;;  %977 = vmatpush.bf16.msra.mxu2 %v870_v42 }
 0x28b   : > { %1024 = vmatpush.bf16.msrb.mxu3 %v2050_v10  ;;  %1062 = vmatpush.bf16.msra.mxu1 %v2054_v11 }
 0x28c   : > { %1046 = vmatpush.bf16.msra.mxu0 %v2183_v38  ;;  %1084 = vmatpush.bf16.msrb.mxu2 %v2185_v32 }
 0x28d   : > { %1446 = vmatmul.msk.bf16.vlgmr.msrb.gmra.mxu0 %vm501_vm1, %v1437_v47  ;;  %1448 = vmatmul.msk.bf16.vlgmr.msra.gmra.mxu2 %vm501_vm1, %v1437_v47 }
 0x28f   : > { %1025 = vmatpush.bf16.msrb.mxu3 %v2076_v22  ;;  %1063 = vmatpush.bf16.msra.mxu1 %v2078_v23 }
 0x290   : > { %1047 = vmatpush.bf16.msra.mxu0 %v2211_v52  ;;  %1085 = vmatpush.bf16.msrb.mxu2 %v2213_v53 }
 0x293   : > { %1026 = vmatpush.bf16.msrb.mxu3 %v2082_v33  ;;  %1064 = vmatpush.bf16.msra.mxu1 %v2084_v34 }
 0x294   : > { %1048 = vmatpush.bf16.msra.mxu0 %v2219_v13  ;;  %1086 = vmatpush.bf16.msrb.mxu2 %v2221_v14 }
 0x296   : > { %926 = vmatmul.bf16.gmra.mxu3 %v1441_v50  ;;  %964 = vmatmul.bf16.gmra.mxu1 %v1441_v50 }
 0x297   : > { %1027 = vmatpush.bf16.msrb.mxu3 %v2143_v29  ;;  %1065 = vmatpush.bf16.msra.mxu1 %v2145_v30 }
 0x298   : > { %1049 = vmatpush.bf16.msra.mxu0 %v869_v41  ;;  %1087 = vmatpush.bf16.msrb.mxu2 %v870_v42 }
 0x29b   : > { %1028 = vmatpush.bf16.msrb.mxu3 %v2157_v45  ;;  %1066 = vmatpush.bf16.msra.mxu1 %v2159_v46 }
 0x29c   : > { %1185 = vmatpush.bf16.msrb.mxu0 %v2183_v38  ;;  %1223 = vmatpush.bf16.msra.mxu2 %v2185_v32  ;;  %v1460_v38 = vld [vmem:[%s2536_s6 + $0x40] sm:$0xf]  ;;  %v1513_v32 = vld [vmem:[%s2536_s6 + $0x44] sm:$0xf0] }
 0x29d   : > { %1447 = vmatmul.msk.bf16.gmra.mxu0 %vm501_vm1, %v1445_v55  ;;  %1449 = vmatmul.msk.bf16.gmra.mxu2 %vm501_vm1, %v1445_v55 }
 0x29f   : > { %1029 = vmatpush.bf16.msrb.mxu3 %v2175_v1  ;;  %1067 = vmatpush.bf16.msra.mxu1 %v2177_v2 }
 0x2a0   : > { %1186 = vmatpush.bf16.msrb.mxu0 %v2211_v52  ;;  %1224 = vmatpush.bf16.msra.mxu2 %v2213_v53  ;;  %v1461_v52 = vor.u32 %v1513_v32, %v1460_v38  ;;  %v1512_v53 = vld [vmem:[%s2536_s6 + $0x44] sm:$0xf] }
 0x2a3   : > { %1030 = vmatpush.bf16.msrb.mxu3 %v2241_v37  ;;  %1068 = vmatpush.bf16.msra.mxu1 %v2243_v24 }
 0x2a4   : > { %1187 = vmatpush.bf16.msrb.mxu0 %v2219_v13  ;;  %1225 = vmatpush.bf16.msra.mxu2 %v2221_v14 }
 0x2a6   : > { %1031 = vmatmul.bf16.vlgmr.msrb.gmra.mxu3 %v1461_v52  ;;  %1069 = vmatmul.bf16.vlgmr.msra.gmra.mxu1 %v1461_v52 }
 0x2a7   : > { %1162 = vmatpush.bf16.msra.mxu3 %v2042_v4  ;;  %1200 = vmatpush.bf16.msrb.mxu1 %v2044_v5  ;;  %v1462_v4 = vld [vmem:[%s2536_s6 + $0x48] sm:$0xf0] }
 0x2a8   : > { %1188 = vmatpush.bf16.msrb.mxu0 %v869_v41  ;;  %1226 = vmatpush.bf16.msra.mxu2 %v870_v42  ;;  %v1465_v5 = vor.u32 %v1512_v53, %v1462_v4 }
 0x2ab   : > { %1163 = vmatpush.bf16.msra.mxu3 %v2050_v10  ;;  %1201 = vmatpush.bf16.msrb.mxu1 %v2054_v11  ;;  %v1468_v10 = vld [vmem:[%s2536_s6 + $0x50] sm:$0xf]  ;;  %v1515_v11 = vld [vmem:[%s2536_s6 + $0x54] sm:$0xf0] }
 0x2ad   : > { %1474 = vmatmul.msk.bf16.vlgmr.msra.gmra.mxu0 %vm501_vm1, %v1465_v5  ;;  %1476 = vmatmul.msk.bf16.vlgmr.msrb.gmra.mxu2 %vm501_vm1, %v1465_v5 }
 0x2af   : > { %1164 = vmatpush.bf16.msra.mxu3 %v2076_v22  ;;  %1202 = vmatpush.bf16.msrb.mxu1 %v2078_v23  ;;  %v1469_v22 = vor.u32 %v1515_v11, %v1468_v10  ;;  %v1514_v23 = vld [vmem:[%s2536_s6 + $0x54] sm:$0xf]  ;;  %v1288_v11 = vld [vmem:[%s2537_s7 + $0x18] sm:$0xff] }
 0x2b3   : > { %1165 = vmatpush.bf16.msra.mxu3 %v2082_v33  ;;  %1203 = vmatpush.bf16.msrb.mxu1 %v2084_v34  ;;  %v1470_v33 = vld [vmem:[%s2536_s6 + $0x58] sm:$0xf0] }
 0x2b4   : > { %v1473_v34 = vor.u32 %v1514_v23, %v1470_v33 }
 0x2b6   : > { %1036 = vmatmul.bf16.gmra.mxu3 %v1469_v22  ;;  %1074 = vmatmul.bf16.gmra.mxu1 %v1469_v22 }
 0x2b7   : > { %1166 = vmatpush.bf16.msra.mxu3 %v2143_v29  ;;  %1204 = vmatpush.bf16.msrb.mxu1 %v2145_v30  ;;  %v1480_v29 = vld [vmem:[%s2536_s6 + $0x20] sm:$0xf]  ;;  %v1509_v30 = vld [vmem:[%s2536_s6 + $0x24] sm:$0xf0] }
 0x2bb   : > { %1167 = vmatpush.bf16.msra.mxu3 %v2157_v45  ;;  %1205 = vmatpush.bf16.msrb.mxu1 %v2159_v46  ;;  %v1481_v45 = vor.u32 %v1509_v30, %v1480_v29  ;;  %v1508_v46 = vld [vmem:[%s2536_s6 + $0x24] sm:$0xf]  ;;  %v1287_v29 = vld [vmem:[%s2537_s7 + $0x10] sm:$0xff] }
 0x2bd   : > { %1477 = vmatmul.msk.bf16.gmra.mxu2 %vm501_vm1, %v1473_v34  ;;  %1475 = vmatmul.msk.bf16.gmra.mxu0 %vm501_vm1, %v1473_v34  ;;  %v1286_v34 = vld [vmem:[%s2537_s7 + $0x8] sm:$0xff] }
 0x2bf   : > { %1168 = vmatpush.bf16.msra.mxu3 %v2175_v1  ;;  %1206 = vmatpush.bf16.msrb.mxu1 %v2177_v2  ;;  %v1482_v1 = vld [vmem:[%s2536_s6 + $0x28] sm:$0xf0] }
 0x2c0   : > { %v1485_v2 = vor.u32 %v1508_v46, %v1482_v1  ;;  %v1292_v46 = vpop.permute.xlu0 %1291 }
 0x2c3   : > { %1169 = vmatpush.bf16.msra.mxu3 %v2241_v37  ;;  %1207 = vmatpush.bf16.msrb.mxu1 %v2243_v24 }
 0x2c6   : > { %1170 = vmatmul.bf16.vlgmr.msra.gmra.mxu3 %v1481_v45  ;;  %1208 = vmatmul.bf16.vlgmr.msrb.gmra.mxu1 %v1481_v45 }
 0x2cd   : > { %1496 = vmatmul.msk.bf16.vlgmr.msra.gmra.mxu2 %vm501_vm1, %v1485_v2  ;;  %1494 = vmatmul.msk.bf16.vlgmr.msrb.gmra.mxu0 %vm501_vm1, %v1485_v2  ;;  %v579_v2 = vand.u32 15, %v2090_v27 }
 0x2cf   : > { %vm2397_vm7 = vcmp.gt.s32.totalorder %v579_v2, 0  ;;  %vm2410_vm10 = vcmp.lt.s32.totalorder %v579_v2, 15 }
 0x2d6   : > { %1175 = vmatmul.bf16.gmra.mxu3 %v1489_v59  ;;  %1213 = vmatmul.bf16.gmra.mxu1 %v1489_v59 }
 0x2dd   : > { %1497 = vmatmul.msk.bf16.gmra.mxu2 %vm501_vm1, %v1493_v62  ;;  %1495 = vmatmul.msk.bf16.gmra.mxu0 %vm501_vm1, %v1493_v62 }
 0x303   : > { %v960_v63 = vpop.f32.mrf.mxu1 }
 0x309   : > { %v922_v0 = vpop.f32.mrf.mxu3 }
 0x30a   : > { %v941_v3 = vpop.f32.mrf.mxu0 }
 0x30b   : > { %v942_v6 = vadd.f32 %v941_v3, %v922_v0  ;;  %v962_v7 = vpop.f32.mrf.mxu1 }
 0x30d   : > { %1101 = vrot.lane.b32.xlu2 %v942_v6, %s1716_s13 }
 0x310   : > { %v979_v8 = vpop.f32.mrf.mxu2 }
 0x311   : > { %v980_v9 = vadd.f32 %v979_v8, %v960_v63  ;;  %v924_v12 = vpop.f32.mrf.mxu3 }
 0x312   : > { %v943_v13 = vpop.f32.mrf.mxu0 }
 0x313   : > { %1109 = vrot.lane.b32.xlu0 %v980_v9, %s1716_s13  ;;  %v965_v14 = vpop.f32.mrf.mxu1  ;;  %v944_v16 = vadd.f32 %v943_v13, %v924_v12 }
 0x318   : > { %v981_v15 = vpop.f32.mrf.mxu2 }
 0x319   : > { %v982_v17 = vadd.f32 %v981_v15, %v962_v7  ;;  %v927_v18 = vpop.f32.mrf.mxu3 }
 0x31a   : > { %v946_v19 = vpop.f32.mrf.mxu0 }
 0x31b   : > { %1111 = vrot.lane.b32.xlu1 %v982_v17, %s1716_s13  ;;  %1103 = vrot.lane.b32.xlu0 %v944_v16, %s1716_s13  ;;  %v947_v20 = vadd.f32 %v946_v19, %v927_v18  ;;  %v967_v21 = vpop.f32.mrf.mxu1 }
 0x320   : > { %v984_v36 = vpop.f32.mrf.mxu2 }
 0x321   : > { %v929_v37 = vpop.f32.mrf.mxu3  ;;  %v985_v24 = vadd.f32 %v984_v36, %v965_v14 }
 0x322   : > { %v948_v35 = vpop.f32.mrf.mxu0 }
 0x323   : > { %1105 = vrot.lane.b32.xlu1 %v947_v20, %s1716_s13  ;;  %1113 = vrot.lane.b32.xlu2 %v985_v24, %s1716_s13  ;;  %v949_v25 = vadd.f32 %v948_v35, %v929_v37  ;;  %v1070_v28 = vpop.f32.mrf.mxu1 }
 0x328   : > { %v986_v39 = vpop.f32.mrf.mxu2 }
 0x329   : > { %v987_v26 = vadd.f32 %v986_v39, %v967_v21  ;;  %v1032_v31 = vpop.f32.mrf.mxu3 }
 0x32a   : > { %v1051_v40 = vpop.f32.mrf.mxu0 }
 0x32b   : > { %v1052_v41 = vadd.f32 %v1051_v40, %v1032_v31  ;;  %1115 = vrot.lane.b32.xlu0 %v987_v26, %s1716_s13  ;;  %1107 = vrot.lane.b32.xlu2 %v949_v25, %s1716_s13  ;;  %v1072_v47 = vpop.f32.mrf.mxu1 }
 0x32d   : > { %1240 = vrot.lane.b32.xlu1 %v1052_v41, %s1717_s17 }
 0x330   : > { %v1089_v42 = vpop.f32.mrf.mxu2 }
 0x331   : > { %v1090_v43 = vadd.f32 %v1089_v42, %v1070_v28  ;;  %v1034_v48 = vpop.f32.mrf.mxu3 }
 0x332   : > { %v1053_v44 = vpop.f32.mrf.mxu0 }
 0x333   : > { %1248 = vrot.lane.b32.xlu2 %v1090_v43, %s1717_s17  ;;  %v1054_v50 = vadd.f32 %v1053_v44, %v1034_v48  ;;  %v1075_v55 = vpop.f32.mrf.mxu1 }
 0x338   : > { %v1091_v49 = vpop.f32.mrf.mxu2 }
 0x339   : > { %v1092_v51 = vadd.f32 %v1091_v49, %v1072_v47  ;;  %v1037_v38 = vpop.f32.mrf.mxu3 }
 0x33a   : > { %v1056_v54 = vpop.f32.mrf.mxu0 }
 0x33b   : > { %1250 = vrot.lane.b32.xlu0 %v1092_v51, %s1717_s17  ;;  %1242 = vrot.lane.b32.xlu2 %v1054_v50, %s1717_s17  ;;  %v1057_v32 = vadd.f32 %v1056_v54, %v1037_v38  ;;  %v1077_v5 = vpop.f32.mrf.mxu1 }
 0x340   : > { %v1094_v52 = vpop.f32.mrf.mxu2 }
 0x341   : > { %v1095_v53 = vadd.f32 %v1094_v52, %v1075_v55  ;;  %v1039_v10 = vpop.f32.mrf.mxu3 }
 0x342   : > { %v1058_v4 = vpop.f32.mrf.mxu0 }
 0x343   : > { %1252 = vrot.lane.b32.xlu1 %v1095_v53, %s1717_s17  ;;  %1244 = vrot.lane.b32.xlu0 %v1057_v32, %s1717_s17  ;;  %v1059_v23 = vadd.f32 %v1058_v4, %v1039_v10  ;;  %v1209_v3 = vpop.f32.mrf.mxu1 }
 0x348   : > { %v1096_v22 = vpop.f32.mrf.mxu2 }
 0x349   : > { %v1097_v33 = vadd.f32 %v1096_v22, %v1077_v5  ;;  %v1171_v0 = vpop.f32.mrf.mxu3 }
 0x34a   : > { %v1190_v12 = vpop.f32.mrf.mxu0 }
 0x34b   : > { %1306 = vperm.xlu0 %1566, %v1288_v11   ;;  %1246 = vrot.lane.b32.xlu1 %v1059_v23, %s1717_s17  ;;  %v1211_v39 = vpop.f32.mrf.mxu1 }
 0x34c   : > { %1254 = vrot.lane.b32.xlu2 %v1097_v33, %s1717_s17 }
 0x350   : > { %v1228_v13 = vpop.f32.mrf.mxu2 }
 0x351   : > { %v1173_v35 = vpop.f32.mrf.mxu3 }
 0x352   : > { %v2429_v41 = vpop.f32.mrf.mxu0 }
 0x353   : > { %1296 = vperm.xlu1 %1567, %v1286_v34   ;;  %v1214_v51 = vpop.f32.mrf.mxu1 }
 0x354   : > { %1301 = vperm.xlu2 %1648, %v1287_v29  }
 0x358   : > { %v2431_v42 = vpop.f32.mrf.mxu2 }
 0x359   : > { %v1176_v50 = vpop.f32.mrf.mxu3 }
 0x35a   : > { %v1195_v52 = vpop.f32.mrf.mxu0 }
 0x360   : > { %v1233_v53 = vpop.f32.mrf.mxu2 }
 0x367   : > { %v1102_v30 = vpop.permute.xlu2 %1101 }
 0x37d   : > { %v1114_v45 = vpop.permute.xlu2 %1113 }
 0x385   : > { %v1110_v57 = vpop.permute.xlu0 %1109  ;;  %v1108_v58 = vpop.permute.xlu2 %1107 }
 0x386   : > { %v1118_v59 = vsel %vm1117_vm6, %v1102_v30, %v1110_v57  ;;  %v1122_v61 = vsel %vm1117_vm6, %v1110_v57, %v1102_v30  ;;  %v1216_v30 = vpop.f32.mrf.mxu1 }
 0x387   : > { %v1130_v6 = vsel %vm2397_vm7, %v1122_v61, 0.0  ;;  %v1131_v7 = vsel %vm2401_vm8, %v1118_v59, 0.0 }
 0x388   : > { %v1172_v8 = vadd.f32 %v1171_v0, %v1130_v6  ;;  %v1210_v9 = vadd.f32 %v1209_v3, %v1131_v7 }
 0x38a   : > { %v1191_v19 = vadd.f32 %v1190_v12, %v1172_v8  ;;  %v1229_v20 = vadd.f32 %v1228_v13, %v1210_v9  ;;  %v1197_v12 = vpop.f32.mrf.mxu0 }
 0x38d   : > { %v2388_v1 = vpop.permute.xlu1 %1111  ;;  %v1104_v14 = vpop.permute.xlu0 %1103 }
 0x38e   : > { %v1249_v15 = vpop.permute.xlu2 %1248  ;;  %v1119_v57 = vsel %vm1117_vm6, %v1104_v14, %v2388_v1 }
 0x38f   : > { %v1133_v9 = vsel %vm2401_vm8, %v1119_v57, 0.0 }
 0x395   : > { %v1106_v60 = vpop.permute.xlu1 %1105 }
 0x396   : > { %v1243_v47 = vpop.permute.xlu2 %1242  ;;  %v1120_v48 = vsel %vm1117_vm6, %v1106_v60, %v1114_v45  ;;  %v1124_v49 = vsel %vm1117_vm6, %v1114_v45, %v1106_v60 }
 0x397   : > { %v1134_v55 = vsel %vm2397_vm7, %v1124_v49, 0.0  ;;  %v1135_v38 = vsel %vm2401_vm8, %v1120_v48, 0.0 }
 0x398   : > { %v1177_v4 = vadd.f32 %v1176_v50, %v1134_v55  ;;  %v1215_v5 = vadd.f32 %v1214_v51, %v1135_v38 }
 0x39a   : > { %v1196_v22 = vadd.f32 %v1195_v52, %v1177_v4  ;;  %v1234_v23 = vadd.f32 %v1233_v53, %v1215_v5 }
 0x39d   : > { %v1116_v40 = vpop.permute.xlu0 %1115 }
 0x39e   : > { %v1121_v10 = vsel %vm1117_vm6, %v1108_v58, %v1116_v40  ;;  %v1125_v11 = vsel %vm1117_vm6, %v1116_v40, %v1108_v58  ;;  %v1123_v58 = vsel %vm1117_vm6, %v2388_v1, %v1104_v14  ;;  %v1235_v1 = vpop.f32.mrf.mxu2 }
 0x39f   : > { %v1241_v18 = vpop.permute.xlu1 %1240  ;;  %v1137_v29 = vsel %vm2401_vm8, %v1121_v10, 0.0  ;;  %v1136_v45 = vsel %vm2397_vm7, %v1125_v11, 0.0  ;;  %v1132_v8 = vsel %vm2397_vm7, %v1123_v58, 0.0 }
 0x3a0   : > { %v1257_v21 = vsel %vm1256_vm9, %v1241_v18, %v1249_v15  ;;  %v1261_v36 = vsel %vm1256_vm9, %v1249_v15, %v1241_v18  ;;  %v1217_v6 = vadd.f32 %v1216_v30, %v1137_v29 }
 0x3a1   : > { %v1269_v37 = vsel %vm2410_vm10, %v1257_v21, 0.0  ;;  %v1270_v24 = vsel %vm2414_vm11, %v1261_v36, 0.0 }
 0x3a2   : > { %v1277_v25 = vadd.f32 %v1269_v37, %v1191_v19  ;;  %v1278_v26 = vadd.f32 %v1270_v24, %v1229_v20  ;;  %v1174_v19 = vadd.f32 %v1173_v35, %v1132_v8  ;;  %v1212_v20 = vadd.f32 %v1211_v39, %v1133_v9 }
 0x3a3   : > { %v1236_v36 = vadd.f32 %v1235_v1, %v1217_v6 }
 0x3a4   : > { %v1309_v28 = vadd.f32 %v1292_v46, %v1277_v25  ;;  %v1310_v31 = vadd.f32 %v1292_v46, %v1278_v26  ;;  %v1178_v46 = vpop.f32.mrf.mxu3  ;;  %v1231_v48 = vadd.f32 %v2431_v42, %v1212_v20 }
 0x3a5   : > { %v1179_v7 = vadd.f32 %v1178_v46, %v1136_v45 }
 0x3a6   : > { %v1317_v43 = vmax.f32 %v1309_v28, 0.0  ;;  %v1318_v44 = vmax.f32 %v1310_v31, 0.0  ;;  %v1255_v32 = vpop.permute.xlu2 %1254 }
 0x3a7   : > { %v1198_v21 = vadd.f32 %v1197_v12, %v1179_v7 }
 0x3a8   : > { %1325 = vst [vmem:[%s2433_s12] sm:$0xff] %v1317_v43 }
 0x3a9   : > { %1326 = vst [vmem:[%s2433_s12 + $0x8] sm:$0xff] %v1318_v44 }
 0x3ad   : > { %v1251_v54 = vpop.permute.xlu0 %1250 }
 0x3ae   : > { %v1302_v60 = vpop.permute.xlu2 %1301  ;;  %v1258_v62 = vsel %vm1256_vm9, %v1243_v47, %v1251_v54  ;;  %v1262_v63 = vsel %vm1256_vm9, %v1251_v54, %v1243_v47  ;;  %v1193_v47 = vadd.f32 %v2429_v41, %v1174_v19 }
 0x3af   : > { %v1271_v31 = vsel %vm2410_vm10, %v1258_v62, 0.0  ;;  %v1272_v40 = vsel %vm2414_vm11, %v1262_v63, 0.0 }
 0x3b0   : > { %v1279_v50 = vadd.f32 %v1271_v31, %v1193_v47  ;;  %v1280_v17 = vadd.f32 %v1272_v40, %v1231_v48 }
 0x3b5   : > { %v1253_v33 = vpop.permute.xlu1 %1252  ;;  %v1245_v34 = vpop.permute.xlu0 %1244 }
 0x3b6   : > { %v1259_v2 = vsel %vm1256_vm9, %v1245_v34, %v1253_v33  ;;  %v1263_v56 = vsel %vm1256_vm9, %v1253_v33, %v1245_v34 }
 0x3b7   : > { %v1273_v59 = vsel %vm2410_vm10, %v1259_v2, 0.0  ;;  %v1274_v61 = vsel %vm2414_vm11, %v1263_v56, 0.0 }
 0x3b8   : > { %v1281_v0 = vadd.f32 %v1273_v59, %v1196_v22  ;;  %v1282_v3 = vadd.f32 %v1274_v61, %v1234_v23 }
 0x3ba   : > { %v1313_v13 = vadd.f32 %v1302_v60, %v1281_v0  ;;  %v1314_v14 = vadd.f32 %v1302_v60, %v1282_v3 }
 0x3bc   : > { %v1321_v15 = vmax.f32 %v1313_v13, 0.0  ;;  %v1322_v18 = vmax.f32 %v1314_v14, 0.0 }
 0x3bd   : > { %v1247_v37 = vpop.permute.xlu1 %1246  ;;  %v1307_v27 = vpop.permute.xlu0 %1306 }
 0x3be   : > { %1329 = vst [vmem:[%s2433_s12 + $0x20] sm:$0xff] %v1321_v15  ;;  %v1260_v24 = vsel %vm1256_vm9, %v1247_v37, %v1255_v32  ;;  %v1264_v25 = vsel %vm1256_vm9, %v1255_v32, %v1247_v37 }
 0x3bf   : > { %1330 = vst [vmem:[%s2433_s12 + $0x28] sm:$0xff] %v1322_v18  ;;  %v1275_v35 = vsel %vm2410_vm10, %v1260_v24, 0.0  ;;  %v1276_v39 = vsel %vm2414_vm11, %v1264_v25, 0.0 }
 0x3c0   : > { %v1283_v26 = vadd.f32 %v1275_v35, %v1198_v21  ;;  %v1284_v28 = vadd.f32 %v1276_v39, %v1236_v36 }
 0x3c2   : > { %v1315_v43 = vadd.f32 %v1307_v27, %v1283_v26  ;;  %v1316_v44 = vadd.f32 %v1307_v27, %v1284_v28 }
 0x3c4   : > { %v1323_v49 = vmax.f32 %v1315_v43, 0.0  ;;  %v1324_v16 = vmax.f32 %v1316_v44, 0.0 }
 0x3c5   : > { %v1297_v51 = vpop.permute.xlu1 %1296 }
 0x3c6   : > { %1331 = vst [vmem:[%s2433_s12 + $0x30] sm:$0xff] %v1323_v49  ;;  %v1311_v54 = vadd.f32 %v1297_v51, %v1279_v50  ;;  %v1312_v55 = vadd.f32 %v1297_v51, %v1280_v17 }
 0x3c7   : > { %1332 = vst [vmem:[%s2433_s12 + $0x38] sm:$0xff] %v1324_v16 }
 0x3c8   : > { %v1319_v41 = vmax.f32 %v1311_v54, 0.0  ;;  %v1320_v42 = vmax.f32 %v1312_v55, 0.0 }
 0x3ca   : > { %1327 = vst [vmem:[%s2433_s12 + $0x10] sm:$0xff] %v1319_v41 }
 0x3cb   : > { %1328 = vst [vmem:[%s2433_s12 + $0x18] sm:$0xff] %v1320_v42 }
 0x3cc   : > { %1676 = shalt.err (!%p1673_p3)
}
 0x3cd   : > { %s1718_s25 = smov 256  }
 0x3ce   : > { %1521 = dma.vmem_to_hbm [thread:$0]  (%p1802_p5), %s1347_s9, 1024, %s1349_s20, %s1334_s21, %s1718_s25, %s1718_s25, %s1714_s26  }
 0x3cf PF: > { %p1527_p4 = scmp.ge.s32.totalorder %s1711_s30, 2  ;;  %s1363_s12 = sand.u32 1, %s1699_s27  }
 0x3d0   : > { %s1364_s19 = scalar_lea.sflag [#allocation3], %s1363_s12 }
 0x3d1   : > { %p1524_p7 = pnand %p1527_p4, %p1806_p6 }
 0x3d3   : > { %p1525_p8 = pneg %p1524_p7 }
 0x3d5   : > { %1694 = dma.done.wait (%p1525_p8), %s1364_s19, 1024  }
 0x3d6   : > { %1696 = vsyncadd (%p1525_p8), %s1364_s19, 4294966272  ;;  %p18_p9 = scmp.ge.s32.totalorder %s1789_s11, 4   ;;  %s2549_s27 = smov %s1703_s28 }
 0x3d7   : > { %s2550_s28 = smov %s1707_s29  ;;  %s2551_s29 = smov %s1800_s14 }
 0x3d8   : > { %s2552_s30 = smov %s1789_s11  ;;  %20 = sbr.rel (!%p18_p9) target bundleno = 3 (0x3), region = 89 }
 0x3dd   :  { %1370 = vsyncpa [#allocation3], 1 }
 0x3de   :  { %1372 = vsyncpa [#allocation3 + $0x1], 1 }

</bundles_post_ra>
